<compile_context>
chip_gen: v7x
topology: tpu7x:2x2x1
jax: 0.10.0
libtpu: 0.0.40
codegen_flags: <defaults>
</compile_context>

<pallas_src>
import jax
import jax.numpy as jnp
from jax.experimental import pallas as pl
from jax.experimental.pallas import tpu as pltpu


def coord_att(x, w1, b1, bn_gamma, bn_beta, bn_mean, bn_var, bn_eps,
              wh, bh, ww, bw):
    """CoordAtt forward. x: (N, C, H, W); 1x1-conv weights as (out_ch, in_ch)."""
    n, c, h, w = x.shape
    hw = h * w
    mip = w1.shape[0]
    oup = wh.shape[0]
    assert oup == c, "CoordAtt recombine requires oup == inp (as in the torch module)"

    f32 = jnp.float32

    # ---- fold inference-mode BN into conv1 --------------------------------
    inv_std = 1.0 / jnp.sqrt(bn_var.astype(f32) + bn_eps)
    scale = bn_gamma.astype(f32) * inv_std                      # (mip,)
    shift = bn_beta.astype(f32) - bn_mean.astype(f32) * scale   # (mip,)
    w1f = w1.astype(f32) * scale[:, None]                       # (mip, C)
    b1f = (b1.astype(f32) * scale + shift).reshape(mip, 1)      # (mip, 1)
    whf = wh.astype(f32)
    bhf = bh.astype(f32).reshape(oup, 1)
    wwf = ww.astype(f32)
    bwf = bw.astype(f32).reshape(oup, 1)

    # ---- lane-dense flattened image layout (contiguous reshape, no copy) --
    x_flat = x.reshape(n, c, hw)

    # One-hot pool / expand matrices: pooling over W / H and the gate
    # broadcasts become MXU matmuls on the flat spatial axis, so the kernel
    # never reshapes or relayouts the (C, H*W) image block.
    flat_idx = jnp.arange(hw)
    s_h = (flat_idx[:, None] // w == jnp.arange(h)[None, :]).astype(x.dtype)  # (HW, H)
    s_w = (flat_idx[:, None] % w == jnp.arange(w)[None, :]).astype(x.dtype)   # (HW, W)
    e_h = s_h.T                                                               # (H, HW)
    e_w = s_w.T                                                               # (W, HW)

    inv_w = 1.0 / float(w)
    inv_h = 1.0 / float(h)
    hi = jax.lax.Precision.HIGHEST   # keep f32 MXU matmuls near-exact

    def kernel(x_ref, sh_ref, sw_ref, eh_ref, ew_ref,
               w1_ref, b1_ref, wh_ref, bh_ref, ww_ref, bw_ref, o_ref):
        xx = x_ref[0]                                           # (C, HW), native dtype

        # coordinate pooling: mean over W / mean over H, f32 accumulation.
        p_h = jnp.dot(xx, sh_ref[...], precision=hi,
                      preferred_element_type=jnp.float32) * inv_w   # (C, H)
        p_w = jnp.dot(xx, sw_ref[...], precision=hi,
                      preferred_element_type=jnp.float32) * inv_h   # (C, W)

        w1_ = w1_ref[...]
        b1_ = b1_ref[...]

        def squeeze(p):
            # conv1 1x1 (BN already folded) + h_swish, pointwise along L.
            y = jnp.dot(w1_, p, precision=hi,
                        preferred_element_type=jnp.float32) + b1_
            return y * (jnp.clip(y + 3.0, 0.0, 6.0) * (1.0 / 6.0))

        y_h = squeeze(p_h)                                      # (mip, H)
        y_w = squeeze(p_w)                                      # (mip, W)

        a_h = jax.nn.sigmoid(
            jnp.dot(wh_ref[...], y_h, precision=hi,
                    preferred_element_type=jnp.float32) + bh_ref[...])   # (oup, H)
        a_w = jax.nn.sigmoid(
            jnp.dot(ww_ref[...], y_w, precision=hi,
                    preferred_element_type=jnp.float32) + bw_ref[...])   # (oup, W)

        # expand gates onto the flat spatial axis (one-hot matmuls, lane-dense)
        gdt = xx.dtype
        ah_flat = jnp.dot(a_h.astype(gdt), eh_ref[...], precision=hi,
                          preferred_element_type=gdt)            # (oup, HW)
        aw_flat = jnp.dot(a_w.astype(gdt), ew_ref[...], precision=hi,
                          preferred_element_type=gdt)            # (oup, HW)

        o_ref[0] = (xx * ah_flat * aw_flat).astype(o_ref.dtype)

    zero2 = lambda i: (0, 0)
    grid_spec = pltpu.PrefetchScalarGridSpec(
        num_scalar_prefetch=0,
        grid=(n,),
        in_specs=[
            pl.BlockSpec((1, c, hw), lambda i: (i, 0, 0)),      # x, one image / step
            pl.BlockSpec((hw, h), zero2),                       # pool-over-W matrix
            pl.BlockSpec((hw, w), zero2),                       # pool-over-H matrix
            pl.BlockSpec((h, hw), zero2),                       # H-gate expander
            pl.BlockSpec((w, hw), zero2),                       # W-gate expander
            pl.BlockSpec((mip, c), zero2),                      # conv1 weight (BN folded)
            pl.BlockSpec((mip, 1), zero2),                      # conv1 bias   (BN folded)
            pl.BlockSpec((oup, mip), zero2),                    # conv_h weight
            pl.BlockSpec((oup, 1), zero2),                      # conv_h bias
            pl.BlockSpec((oup, mip), zero2),                    # conv_w weight
            pl.BlockSpec((oup, 1), zero2),                      # conv_w bias
        ],
        out_specs=pl.BlockSpec((1, c, hw), lambda i: (i, 0, 0)),
    )

    # Explicit VMEM budget: double-buffered in+out blocks + constants + margin.
    itemsize = x.dtype.itemsize
    io_block = c * hw * itemsize
    const_bytes = 2 * hw * (h + w) * itemsize + \
        4 * (mip * c + mip + 2 * oup * mip + 2 * oup)
    vmem_limit = int(min(64 << 20,
                         max(32 << 20, 4 * io_block + 2 * const_bytes + (2 << 20))))

    out_flat = pl.pallas_call(
        kernel,
        out_shape=jax.ShapeDtypeStruct((n, c, hw), x.dtype),
        grid_spec=grid_spec,
        compiler_params=pltpu.CompilerParams(
            dimension_semantics=("parallel",),
            vmem_limit_bytes=vmem_limit),
    )(x_flat, s_h, s_w, e_h, e_w, w1f, b1f, whf, bhf, wwf, bwf)

    return out_flat.reshape(n, c, h, w)


def coord_att_ref(x, w1, b1, bn_gamma, bn_beta, bn_mean, bn_var, bn_eps,
                  wh, bh, ww, bw):
    """Plain-JAX reference mirroring the torch module (inference-mode BN)."""
    n, c, h, w = x.shape
    hp = "highest"
    x_h = jnp.mean(x, axis=3, keepdims=True)                       # (n,c,h,1)
    x_w = jnp.mean(x, axis=2, keepdims=True)                       # (n,c,1,w)
    x_w = jnp.transpose(x_w, (0, 1, 3, 2))                         # (n,c,w,1)
    y = jnp.concatenate([x_h, x_w], axis=2)                        # (n,c,h+w,1)
    y = jnp.einsum("mc,nclz->nmlz", w1, y, precision=hp) + b1[None, :, None, None]
    y = (y - bn_mean[None, :, None, None]) / jnp.sqrt(bn_var[None, :, None, None] + bn_eps)
    y = y * bn_gamma[None, :, None, None] + bn_beta[None, :, None, None]
    y = y * jnp.clip(y + 3.0, 0.0, 6.0) / 6.0                      # h_swish
    y_h = y[:, :, :h, :]                                           # (n,mip,h,1)
    y_w = jnp.transpose(y[:, :, h:, :], (0, 1, 3, 2))              # (n,mip,1,w)
    a_h = jax.nn.sigmoid(jnp.einsum("om,nmhz->nohz", wh, y_h, precision=hp)
                         + bh[None, :, None, None])
    a_w = jax.nn.sigmoid(jnp.einsum("om,nmzw->nozw", ww, y_w, precision=hp)
                         + bw[None, :, None, None])
    return x * a_w * a_h


if __name__ == "__main__":
    key = jax.random.PRNGKey(0)
    ks = jax.random.split(key, 11)

    # Small shapes consistent with the module: NCHW, inp == oup, reduction=32.
    N, C, H, W = 2, 4, 16, 16
    reduction = 32
    mip = max(8, C // reduction)   # == 8, as in the torch module
    oup = C

    x = jax.random.normal(ks[0], (N, C, H, W), jnp.float32)

    w1 = jax.random.normal(ks[1], (mip, C), jnp.float32) * 0.5
    b1 = jax.random.normal(ks[2], (mip,), jnp.float32) * 0.1
    wh = jax.random.normal(ks[3], (oup, mip), jnp.float32) * 0.5
    bh = jax.random.normal(ks[4], (oup,), jnp.float32) * 0.1
    ww = jax.random.normal(ks[5], (oup, mip), jnp.float32) * 0.5
    bw = jax.random.normal(ks[6], (oup,), jnp.float32) * 0.1

    bn_gamma = jax.random.uniform(ks[7], (mip,), jnp.float32, 0.5, 1.5)
    bn_beta = jax.random.normal(ks[8], (mip,), jnp.float32) * 0.1
    bn_mean = jax.random.normal(ks[9], (mip,), jnp.float32) * 0.1
    bn_var = jax.random.uniform(ks[10], (mip,), jnp.float32, 0.5, 1.5)
    bn_eps = 1e-5

    out = coord_att(x, w1, b1, bn_gamma, bn_beta, bn_mean, bn_var, bn_eps,
                    wh, bh, ww, bw)
    out = jax.block_until_ready(out)

    ref = coord_att_ref(x, w1, b1, bn_gamma, bn_beta, bn_mean, bn_var, bn_eps,
                        wh, bh, ww, bw)

    assert out.shape == x.shape and out.dtype == x.dtype
    assert jnp.allclose(out, ref, atol=1e-4, rtol=1e-4), \
        float(jnp.max(jnp.abs(out - ref)))

    print("KERNEL_OK")
</pallas_src>

<mosaic_0001>
module attributes {stable_mosaic.version = 11 : i64} {
  func.func @kernel(%arg0: i32, %arg1: memref<1x4x256xf32, #tpu.memory_space<vmem>>, %arg2: memref<256x16xf32, #tpu.memory_space<vmem>>, %arg3: memref<256x16xf32, #tpu.memory_space<vmem>>, %arg4: memref<16x256xf32, #tpu.memory_space<vmem>>, %arg5: memref<16x256xf32, #tpu.memory_space<vmem>>, %arg6: memref<8x4xf32, #tpu.memory_space<vmem>>, %arg7: memref<8x1xf32, #tpu.memory_space<vmem>>, %arg8: memref<4x8xf32, #tpu.memory_space<vmem>>, %arg9: memref<4x1xf32, #tpu.memory_space<vmem>>, %arg10: memref<4x8xf32, #tpu.memory_space<vmem>>, %arg11: memref<4x1xf32, #tpu.memory_space<vmem>>, %arg12: memref<1x4x256xf32, #tpu.memory_space<vmem>>) attributes {dimension_semantics = [#tpu.dimension_semantics<parallel>], iteration_bounds = array<i64: 2>, scalar_prefetch = 0 : i64, scratch_operands = 0 : i64, tpu.core_type = #tpu.core_type<tc>, window_params = [{transform_indices = @transform_0, window_bounds = array<i64: 1, 4, 256>}, {pipeline_mode = #tpu.pipeline_mode<synchronous>, transform_indices = @transform_1, window_bounds = array<i64: 256, 16>}, {pipeline_mode = #tpu.pipeline_mode<synchronous>, transform_indices = @transform_2, window_bounds = array<i64: 256, 16>}, {pipeline_mode = #tpu.pipeline_mode<synchronous>, transform_indices = @transform_3, window_bounds = array<i64: 16, 256>}, {pipeline_mode = #tpu.pipeline_mode<synchronous>, transform_indices = @transform_4, window_bounds = array<i64: 16, 256>}, {pipeline_mode = #tpu.pipeline_mode<synchronous>, transform_indices = @transform_5, window_bounds = array<i64: 8, 4>}, {pipeline_mode = #tpu.pipeline_mode<synchronous>, transform_indices = @transform_6, window_bounds = array<i64: 8, 1>}, {pipeline_mode = #tpu.pipeline_mode<synchronous>, transform_indices = @transform_7, window_bounds = array<i64: 4, 8>}, {pipeline_mode = #tpu.pipeline_mode<synchronous>, transform_indices = @transform_8, window_bounds = array<i64: 4, 1>}, {pipeline_mode = #tpu.pipeline_mode<synchronous>, transform_indices = @transform_9, window_bounds = array<i64: 4, 8>}, {pipeline_mode = #tpu.pipeline_mode<synchronous>, transform_indices = @transform_10, window_bounds = array<i64: 4, 1>}, {transform_indices = @transform_11, window_bounds = array<i64: 1, 4, 256>}]} {
    %c0 = arith.constant 0 : index
    %c0_0 = arith.constant 0 : index
    %c0_1 = arith.constant 0 : index
    %0 = vector.load %arg1[%c0, %c0_0, %c0_1] : memref<1x4x256xf32, #tpu.memory_space<vmem>>, vector<1x4x256xf32>
    %1 = vector.shape_cast %0 : vector<1x4x256xf32> to vector<4x256xf32>
    %c0_2 = arith.constant 0 : index
    %c0_3 = arith.constant 0 : index
    %2 = vector.load %arg2[%c0_2, %c0_3] : memref<256x16xf32, #tpu.memory_space<vmem>>, vector<256x16xf32>
    %cst = arith.constant dense<0.000000e+00> : vector<4x16xf32>
    %3 = tpu.matmul %1, %2, %cst {dimension_numbers = #tpu.dot_dimension_numbers<[1], [0], [0], [1], [0, 0, 1, 1], [], []>, precision = #tpu.contract_precision<fp32>} : vector<4x256xf32>, vector<256x16xf32>, vector<4x16xf32> -> vector<4x16xf32>
    %cst_4 = arith.constant 6.250000e-02 : f32
    %4 = vector.broadcast %cst_4 : f32 to vector<4x16xf32>
    %5 = arith.mulf %3, %4 : vector<4x16xf32>
    %c0_5 = arith.constant 0 : index
    %c0_6 = arith.constant 0 : index
    %6 = vector.load %arg3[%c0_5, %c0_6] : memref<256x16xf32, #tpu.memory_space<vmem>>, vector<256x16xf32>
    %cst_7 = arith.constant dense<0.000000e+00> : vector<4x16xf32>
    %7 = tpu.matmul %1, %6, %cst_7 {dimension_numbers = #tpu.dot_dimension_numbers<[1], [0], [0], [1], [0, 0, 1, 1], [], []>, precision = #tpu.contract_precision<fp32>} : vector<4x256xf32>, vector<256x16xf32>, vector<4x16xf32> -> vector<4x16xf32>
    %cst_8 = arith.constant 6.250000e-02 : f32
    %8 = vector.broadcast %cst_8 : f32 to vector<4x16xf32>
    %9 = arith.mulf %7, %8 : vector<4x16xf32>
    %c0_9 = arith.constant 0 : index
    %c0_10 = arith.constant 0 : index
    %10 = vector.load %arg6[%c0_9, %c0_10] : memref<8x4xf32, #tpu.memory_space<vmem>>, vector<8x4xf32>
    %c0_11 = arith.constant 0 : index
    %c0_12 = arith.constant 0 : index
    %11 = vector.load %arg7[%c0_11, %c0_12] : memref<8x1xf32, #tpu.memory_space<vmem>>, vector<8x1xf32>
    %cst_13 = arith.constant dense<0.000000e+00> : vector<8x16xf32>
    %12 = tpu.matmul %10, %5, %cst_13 {dimension_numbers = #tpu.dot_dimension_numbers<[1], [0], [0], [1], [0, 0, 1, 1], [], []>, precision = #tpu.contract_precision<fp32>} : vector<8x4xf32>, vector<4x16xf32>, vector<8x16xf32> -> vector<8x16xf32>
    %13 = vector.broadcast %11 : vector<8x1xf32> to vector<8x16xf32>
    %14 = arith.addf %12, %13 : vector<8x16xf32>
    %cst_14 = arith.constant 3.000000e+00 : f32
    %15 = vector.broadcast %cst_14 : f32 to vector<8x16xf32>
    %16 = arith.addf %14, %15 : vector<8x16xf32>
    %cst_15 = arith.constant 0.000000e+00 : f32
    %cst_16 = arith.constant 6.000000e+00 : f32
    %17 = vector.broadcast %cst_15 : f32 to vector<8x16xf32>
    %18 = arith.maximumf %17, %16 : vector<8x16xf32>
    %19 = vector.broadcast %cst_16 : f32 to vector<8x16xf32>
    %20 = arith.minimumf %19, %18 : vector<8x16xf32>
    %cst_17 = arith.constant 0.166666672 : f32
    %21 = vector.broadcast %cst_17 : f32 to vector<8x16xf32>
    %22 = arith.mulf %20, %21 : vector<8x16xf32>
    %23 = arith.mulf %14, %22 : vector<8x16xf32>
    %cst_18 = arith.constant dense<0.000000e+00> : vector<8x16xf32>
    %24 = tpu.matmul %10, %9, %cst_18 {dimension_numbers = #tpu.dot_dimension_numbers<[1], [0], [0], [1], [0, 0, 1, 1], [], []>, precision = #tpu.contract_precision<fp32>} : vector<8x4xf32>, vector<4x16xf32>, vector<8x16xf32> -> vector<8x16xf32>
    %25 = vector.broadcast %11 : vector<8x1xf32> to vector<8x16xf32>
    %26 = arith.addf %24, %25 : vector<8x16xf32>
    %cst_19 = arith.constant 3.000000e+00 : f32
    %27 = vector.broadcast %cst_19 : f32 to vector<8x16xf32>
    %28 = arith.addf %26, %27 : vector<8x16xf32>
    %cst_20 = arith.constant 0.000000e+00 : f32
    %cst_21 = arith.constant 6.000000e+00 : f32
    %29 = vector.broadcast %cst_20 : f32 to vector<8x16xf32>
    %30 = arith.maximumf %29, %28 : vector<8x16xf32>
    %31 = vector.broadcast %cst_21 : f32 to vector<8x16xf32>
    %32 = arith.minimumf %31, %30 : vector<8x16xf32>
    %cst_22 = arith.constant 0.166666672 : f32
    %33 = vector.broadcast %cst_22 : f32 to vector<8x16xf32>
    %34 = arith.mulf %32, %33 : vector<8x16xf32>
    %35 = arith.mulf %26, %34 : vector<8x16xf32>
    %c0_23 = arith.constant 0 : index
    %c0_24 = arith.constant 0 : index
    %36 = vector.load %arg8[%c0_23, %c0_24] : memref<4x8xf32, #tpu.memory_space<vmem>>, vector<4x8xf32>
    %cst_25 = arith.constant dense<0.000000e+00> : vector<4x16xf32>
    %37 = tpu.matmul %36, %23, %cst_25 {dimension_numbers = #tpu.dot_dimension_numbers<[1], [0], [0], [1], [0, 0, 1, 1], [], []>, precision = #tpu.contract_precision<fp32>} : vector<4x8xf32>, vector<8x16xf32>, vector<4x16xf32> -> vector<4x16xf32>
    %c0_26 = arith.constant 0 : index
    %c0_27 = arith.constant 0 : index
    %38 = vector.load %arg9[%c0_26, %c0_27] : memref<4x1xf32, #tpu.memory_space<vmem>>, vector<4x1xf32>
    %39 = vector.broadcast %38 : vector<4x1xf32> to vector<4x16xf32>
    %40 = arith.addf %37, %39 : vector<4x16xf32>
    %41 = arith.negf %40 : vector<4x16xf32>
    %42 = math.exp %41 : vector<4x16xf32>
    %cst_28 = arith.constant 1.000000e+00 : f32
    %43 = vector.broadcast %cst_28 : f32 to vector<4x16xf32>
    %44 = arith.addf %43, %42 : vector<4x16xf32>
    %45 = arith.divf %43, %44 : vector<4x16xf32>
    %c0_29 = arith.constant 0 : index
    %c0_30 = arith.constant 0 : index
    %46 = vector.load %arg10[%c0_29, %c0_30] : memref<4x8xf32, #tpu.memory_space<vmem>>, vector<4x8xf32>
    %cst_31 = arith.constant dense<0.000000e+00> : vector<4x16xf32>
    %47 = tpu.matmul %46, %35, %cst_31 {dimension_numbers = #tpu.dot_dimension_numbers<[1], [0], [0], [1], [0, 0, 1, 1], [], []>, precision = #tpu.contract_precision<fp32>} : vector<4x8xf32>, vector<8x16xf32>, vector<4x16xf32> -> vector<4x16xf32>
    %c0_32 = arith.constant 0 : index
    %c0_33 = arith.constant 0 : index
    %48 = vector.load %arg11[%c0_32, %c0_33] : memref<4x1xf32, #tpu.memory_space<vmem>>, vector<4x1xf32>
    %49 = vector.broadcast %48 : vector<4x1xf32> to vector<4x16xf32>
    %50 = arith.addf %47, %49 : vector<4x16xf32>
    %51 = arith.negf %50 : vector<4x16xf32>
    %52 = math.exp %51 : vector<4x16xf32>
    %cst_34 = arith.constant 1.000000e+00 : f32
    %53 = vector.broadcast %cst_34 : f32 to vector<4x16xf32>
    %54 = arith.addf %53, %52 : vector<4x16xf32>
    %55 = arith.divf %53, %54 : vector<4x16xf32>
    %c0_35 = arith.constant 0 : index
    %c0_36 = arith.constant 0 : index
    %56 = vector.load %arg4[%c0_35, %c0_36] : memref<16x256xf32, #tpu.memory_space<vmem>>, vector<16x256xf32>
    %cst_37 = arith.constant dense<0.000000e+00> : vector<4x256xf32>
    %57 = tpu.matmul %45, %56, %cst_37 {dimension_numbers = #tpu.dot_dimension_numbers<[1], [0], [0], [1], [0, 0, 1, 1], [], []>, precision = #tpu.contract_precision<fp32>} : vector<4x16xf32>, vector<16x256xf32>, vector<4x256xf32> -> vector<4x256xf32>
    %c0_38 = arith.constant 0 : index
    %c0_39 = arith.constant 0 : index
    %58 = vector.load %arg5[%c0_38, %c0_39] : memref<16x256xf32, #tpu.memory_space<vmem>>, vector<16x256xf32>
    %cst_40 = arith.constant dense<0.000000e+00> : vector<4x256xf32>
    %59 = tpu.matmul %55, %58, %cst_40 {dimension_numbers = #tpu.dot_dimension_numbers<[1], [0], [0], [1], [0, 0, 1, 1], [], []>, precision = #tpu.contract_precision<fp32>} : vector<4x16xf32>, vector<16x256xf32>, vector<4x256xf32> -> vector<4x256xf32>
    %60 = arith.mulf %1, %57 : vector<4x256xf32>
    %61 = arith.mulf %60, %59 : vector<4x256xf32>
    %c0_41 = arith.constant 0 : index
    %c0_42 = arith.constant 0 : index
    %c0_43 = arith.constant 0 : index
    %62 = vector.load %arg12[%c0_41, %c0_42, %c0_43] : memref<1x4x256xf32, #tpu.memory_space<vmem>>, vector<1x4x256xf32>
    %63 = vector.shape_cast %62 : vector<1x4x256xf32> to vector<4x256xf32>
    %64 = vector.shape_cast %61 : vector<4x256xf32> to vector<1x4x256xf32>
    tpu.vector_store %arg12[%c0_41, %c0_42, %c0_43], %64 {strides = array<i32>} : memref<1x4x256xf32, #tpu.memory_space<vmem>>, vector<1x4x256xf32>,
    return
  }
  func.func @transform_0(%arg0: i32) -> (i32, i32, i32) {
    %c0_i32 = arith.constant 0 : i32
    %c0_i32_0 = arith.constant 0 : i32
    %c0_i32_1 = arith.constant 0 : i32
    return %arg0, %c0_i32, %c0_i32_0 : i32, i32, i32
  }
  func.func @transform_1(%arg0: i32) -> (i32, i32) {
    %c0_i32 = arith.constant 0 : i32
    %c0_i32_0 = arith.constant 0 : i32
    %c0_i32_1 = arith.constant 0 : i32
    return %c0_i32, %c0_i32_0 : i32, i32
  }
  func.func @transform_2(%arg0: i32) -> (i32, i32) {
    %c0_i32 = arith.constant 0 : i32
    %c0_i32_0 = arith.constant 0 : i32
    %c0_i32_1 = arith.constant 0 : i32
    return %c0_i32, %c0_i32_0 : i32, i32
  }
  func.func @transform_3(%arg0: i32) -> (i32, i32) {
    %c0_i32 = arith.constant 0 : i32
    %c0_i32_0 = arith.constant 0 : i32
    %c0_i32_1 = arith.constant 0 : i32
    return %c0_i32, %c0_i32_0 : i32, i32
  }
  func.func @transform_4(%arg0: i32) -> (i32, i32) {
    %c0_i32 = arith.constant 0 : i32
    %c0_i32_0 = arith.constant 0 : i32
    %c0_i32_1 = arith.constant 0 : i32
    return %c0_i32, %c0_i32_0 : i32, i32
  }
  func.func @transform_5(%arg0: i32) -> (i32, i32) {
    %c0_i32 = arith.constant 0 : i32
    %c0_i32_0 = arith.constant 0 : i32
    %c0_i32_1 = arith.constant 0 : i32
    return %c0_i32, %c0_i32_0 : i32, i32
  }
  func.func @transform_6(%arg0: i32) -> (i32, i32) {
    %c0_i32 = arith.constant 0 : i32
    %c0_i32_0 = arith.constant 0 : i32
    %c0_i32_1 = arith.constant 0 : i32
    return %c0_i32, %c0_i32_0 : i32, i32
  }
  func.func @transform_7(%arg0: i32) -> (i32, i32) {
    %c0_i32 = arith.constant 0 : i32
    %c0_i32_0 = arith.constant 0 : i32
    %c0_i32_1 = arith.constant 0 : i32
    return %c0_i32, %c0_i32_0 : i32, i32
  }
  func.func @transform_8(%arg0: i32) -> (i32, i32) {
    %c0_i32 = arith.constant 0 : i32
    %c0_i32_0 = arith.constant 0 : i32
    %c0_i32_1 = arith.constant 0 : i32
    return %c0_i32, %c0_i32_0 : i32, i32
  }
  func.func @transform_9(%arg0: i32) -> (i32, i32) {
    %c0_i32 = arith.constant 0 : i32
    %c0_i32_0 = arith.constant 0 : i32
    %c0_i32_1 = arith.constant 0 : i32
    return %c0_i32, %c0_i32_0 : i32, i32
  }
  func.func @transform_10(%arg0: i32) -> (i32, i32) {
    %c0_i32 = arith.constant 0 : i32
    %c0_i32_0 = arith.constant 0 : i32
    %c0_i32_1 = arith.constant 0 : i32
    return %c0_i32, %c0_i32_0 : i32, i32
  }
  func.func @transform_11(%arg0: i32) -> (i32, i32, i32) {
    %c0_i32 = arith.constant 0 : i32
    %c0_i32_0 = arith.constant 0 : i32
    %c0_i32_1 = arith.constant 0 : i32
    return %arg0, %c0_i32, %c0_i32_0 : i32, i32, i32
  }
}

</mosaic_0001>

<bundles_post_ra>
// kernel: tpu_custom_call.1
= control target key start
LH: loop header
LB: loop body
LE: loop exit
PB: predicated region body
PF: predicated region fallthrough
CT: control target
= control target key end

     0   :  { %s7783_s0 = inlined_call_operand.vmem [shape: f32[2,4,256], index: 0, kind: input, shape index: {}]   ;;  %s7784_s1 = inlined_call_operand.vmem [shape: f32[256,16], index: 1, kind: input, shape index: {}]   ;;  %s7785_s2 = inlined_call_operand.vmem [shape: f32[256,16], index: 2, kind: input, shape index: {}]   ;;  %s7786_s3 = inlined_call_operand.vmem [shape: f32[16,256], index: 3, kind: input, shape index: {}]   ;;  %s7787_s4 = inlined_call_operand.vmem [shape: f32[16,256], index: 4, kind: input, shape index: {}]   ;;  %s7788_s5 = inlined_call_operand.vmem [shape: f32[8,4], index: 5, kind: input, shape index: {}]   ;;  %s7789_s6 = inlined_call_operand.vmem [shape: f32[8,1], index: 6, kind: input, shape index: {}]   ;;  %s7790_s7 = inlined_call_operand.vmem [shape: f32[4,8], index: 7, kind: input, shape index: {}]   ;;  %s7791_s8 = inlined_call_operand.vmem [shape: f32[4,1], index: 8, kind: input, shape index: {}]   ;;  %s7792_s9 = inlined_call_operand.vmem [shape: f32[4,8], index: 9, kind: input, shape index: {}]   ;;  %s7793_s10 = inlined_call_operand.vmem [shape: f32[4,1], index: 10, kind: input, shape index: {}]   ;;  %s7794_s11 = inlined_call_operand.hbm [shape: f32[2,4,256], index: 11, kind: output, shape index: {}]  }
   0x1   :  { %7883 = sst [smem:[#allocation22_spill]] %s7783_s0 }
   0x2   :  { %16 = vsyncpa [#allocation3], 0 }
   0x3   :  { %18 = vsyncpa [#allocation3 + $0x1], 0  ;;  %s6388_s17 = smov 0   ;;  %s6390_s18 = smov 0  }
   0x4   :  { %s6392_s19 = smov 0   ;;  %s6394_s20 = smov 0  }
   0x5 LB: > { %s6409_s21 = sadd.s32 4294967295, %s6322_s20   ;;  %s5106_s22 = sadd.s32 4294967294, %s6322_s20   ;;  %s6322_s20 = sphi %s6394_s20, %s8016_s20   ;;  %s6318_s19 = sphi %s6392_s19, %s8015_s19   ;;  %s6314_s18 = sphi %s6390_s18, %s8014_s18   ;;  %s6310_s17 = sphi %s6388_s17, %s8013_s17  }
   0x6   : > { %s6413_s23 = sadd.s32 1, %s6322_s20   ;;  %s267_s24 = sadd.s32 1, %s6318_s19 }
   0x7   : > { %s264_s25 = ssub.s32 %s6322_s20, %s6413_s23  ;;  %p277_p0 = scmp.ne.s32.totalorder %s6318_s19, %s6314_s18 }
   0x8   : > { %p265_p1 = scmp.eq.s32.totalorder %s264_s25, 0  ;;  %p278_p2 = scmp.eq.s32.totalorder %s6409_s21, 1 }
   0x9   : > { %p283_p3 = scmp.ne.s32.totalorder %s6314_s18, %s6310_s17  ;;  %p284_p4 = scmp.eq.s32.totalorder %s5106_s22, 1 }
   0xa   : > { %s6424_s26 = scalar_select %p265_p1, %s6318_s19, %s267_s24  }
   0xb   : > { %p6426_p5 = por %p278_p2, %p277_p0  ;;  %p6430_p6 = por %p284_p4, %p283_p3 }
   0xc   : > { %p5109_p7 = scmp.ge.s32.totalorder %s6322_s20, 1  ;;  %p340_p8 = scmp.lt.s32.totalorder %s6322_s20, 3 }
   0xe   : > { %p341_p9 = pnand %p5109_p7, %p340_p8 }
  0x10   : > { %344 = sbr.rel (%p341_p9) target bundleno = 1295 (0x50f), region = 64 }
  0x17   : > { %v402_v0 = vld [vmem:[%s7784_s1 + $0x80] sm:$0xff]  ;;  %v403_v1 = vld [vmem:[%s7784_s1 + $0x88] sm:$0xff]  ;;  %v404_v7 = vld [vmem:[%s7784_s1 + $0x90] sm:$0xff]  ;;  %p380_p10 = scmp.lt.s32.totalorder %s6409_s21, 1  ;;  %s7888_s0 = sld [smem:[#allocation22_spill]]  ;;  %vm6325_vm0 = vmmov 0  }
  0x18   : > { %v386_v2 = vld [vmem:[%s7784_s1] sm:$0xff]  ;;  %v470_v3 = vand.u32 4294901760, %v402_v0  ;;  %v473_v4 = vand.u32 4294901760, %v403_v1  ;;  %v387_v5 = vld [vmem:[%s7784_s1 + $0x8] sm:$0xff]  ;;  %v405_v8 = vld [vmem:[%s7784_s1 + $0x98] sm:$0xff]  ;;  %v476_v10 = vand.u32 4294901760, %v404_v7 }
  0x19   : > { %v422_v6 = vand.u32 4294901760, %v386_v2  ;;  %v425_v9 = vand.u32 4294901760, %v387_v5  ;;  %v479_v11 = vand.u32 4294901760, %v405_v8  ;;  %v388_v12 = vld [vmem:[%s7784_s1 + $0x10] sm:$0xff]  ;;  %v389_v13 = vld [vmem:[%s7784_s1 + $0x18] sm:$0xff]  ;;  %v406_v18 = vld [vmem:[%s7784_s1 + $0xa0] sm:$0xff] }
  0x1a   : > { %v6460_v14 = vpack.c.bf16 %v473_v4, %v470_v3  ;;  %v428_v16 = vand.u32 4294901760, %v388_v12  ;;  %v431_v17 = vand.u32 4294901760, %v389_v13  ;;  %v407_v19 = vld [vmem:[%s7784_s1 + $0xa8] sm:$0xff]  ;;  %v390_v23 = vld [vmem:[%s7784_s1 + $0x20] sm:$0xff]  ;;  %v6483_v25 = vsub.f32 %v404_v7, %v476_v10  ;;  %v408_v37 = vld [vmem:[%s7784_s1 + $0xb0] sm:$0xff]  ;;  %s6660_s14 = scalar_select %p380_p10, %s6409_s21, 1 }
  0x1b   : > { %v6462_v15 = vsub.f32 %v386_v2, %v422_v6  ;;  %v6470_v20 = vpack.c.bf16 %v425_v9, %v422_v6  ;;  %v6472_v21 = vsub.f32 %v387_v5, %v425_v9  ;;  %v6474_v22 = vpack.c.bf16 %v479_v11, %v476_v10  ;;  %v391_v24 = vld [vmem:[%s7784_s1 + $0x28] sm:$0xff]  ;;  %v409_v42 = vld [vmem:[%s7784_s1 + $0xb8] sm:$0xff]  ;;  %v392_v55 = vld [vmem:[%s7784_s1 + $0x30] sm:$0xff]  ;;  %s5121_s13 = sshll.u32 %s6409_s21, 7  ;;  %s6327_s21 = smov [#allocation2]  }
  0x1c   : > { %5711 = vmatprep.subr.bf16.mxu0 %v6460_v14  ;;  %v6485_v26 = vsub.f32 %v405_v8, %v479_v11  ;;  %v6487_v27 = vpack.c.bf16 %v431_v17, %v428_v16  ;;  %v6489_v28 = vsub.f32 %v388_v12, %v428_v16  ;;  %v482_v29 = vand.u32 4294901760, %v406_v18  ;;  %v393_v56 = vld [vmem:[%s7784_s1 + $0x38] sm:$0xff]  ;;  %v410_v5 = vld [vmem:[%s7784_s1 + $0xc0] sm:$0xff]  ;;  %v411_v6 = vld [vmem:[%s7784_s1 + $0xc8] sm:$0xff]  ;;  %s5120_s30 = sshll.u32 %s6660_s14, 3  ;;  %s7741_s25 = scalar_lea.hbm %s7794_s11, %s5121_s13 }
  0x1d   : > { %5713 = vmatpush3.bf16.msra.mxu0 %v6470_v20  ;;  %v485_v30 = vand.u32 4294901760, %v407_v19  ;;  %v6492_v31 = vsub.f32 %v402_v0, %v470_v3  ;;  %v6494_v32 = vsub.f32 %v403_v1, %v473_v4  ;;  %v434_v33 = vand.u32 4294901760, %v390_v23  ;;  %v394_v11 = vld [vmem:[%s7784_s1 + $0x40] sm:$0xff]  ;;  %s6717_s24 = scalar_lea.vmem %s7888_s0, %s5120_s30  ;;  %s377_s30 = sand.u32 1, %s6314_s18  }
  0x1e   : > { %5715 = vmatprep.subr.bf16.mxu0 %v6474_v22  ;;  %v437_v34 = vand.u32 4294901760, %v391_v24  ;;  %v7812_v35 = vand.u32 4294901760, %v6462_v15  ;;  %v7811_v36 = vand.u32 4294901760, %v6472_v21  ;;  %v6502_v38 = vsub.f32 %v389_v13, %v431_v17  ;;  %s5110_s12 = sshll.u32 %s377_s30, 3  ;;  %s5033_s29 = scalar_lea.sflag [#allocation3], %s377_s30 }
  0x1f   : > { %v6504_v39 = vpack.c.bf16 %v485_v30, %v482_v29  ;;  %v6506_v40 = vsub.f32 %v406_v18, %v482_v29  ;;  %v7814_v41 = vand.u32 4294901760, %v6492_v31  ;;  %v6512_v43 = vsub.f32 %v407_v19, %v485_v30  ;;  %v395_v29 = vld [vmem:[%s7784_s1 + $0x48] sm:$0xff]  ;;  %s379_s14 = scalar_lea.vmem [#allocation2], %s5110_s12 }
  0x20   : > { %v7813_v44 = vand.u32 4294901760, %v6494_v32  ;;  %v6515_v45 = vpack.c.bf16 %v437_v34, %v434_v33  ;;  %v6517_v46 = vsub.f32 %v390_v23, %v434_v33  ;;  %v537_v48 = vsub.f32 %v6462_v15, %v7812_v35  ;;  %s5047_s15 = sshll.u32 %s379_s14, 4  ;;  %s7743_s15 = int_to_ptr.vmem [resolvable:$true] %s5047_s15 }
  0x21   : > { %5717 = vmatpush3.bf16.msra.mxu0 %v6487_v27  ;;  %v649_v47 = vsub.f32 %v6492_v31, %v7814_v41  ;;  %v544_v49 = vsub.f32 %v6472_v21, %v7811_v36  ;;  %v488_v50 = vand.u32 4294901760, %v408_v37  ;;  %v491_v52 = vand.u32 4294901760, %v409_v42  ;;  %v385_v41 = vld [vmem:[%s6717_s24] sm:$0xff]  ;;  %s6260_s0 = scalar_lea.vmem %s7743_s15, 128 }
  0x22   : > { %5719 = vmatprep.subr.bf16.mxu0 %v6504_v39  ;;  %v656_v51 = vsub.f32 %v6494_v32, %v7813_v44  ;;  %v7810_v53 = vand.u32 4294901760, %v6483_v25  ;;  %v7807_v54 = vand.u32 4294901760, %v6485_v26  ;;  %v6541_v58 = vsub.f32 %v391_v24, %v437_v34  ;;  %p6261_p11 = scmp.ne.s32.totalorder %s7743_s15, %s6260_s0 }
  0x23   : > { %v650_v57 = vand.u32 4294901760, %v649_v47  ;;  %v538_v59 = vand.u32 4294901760, %v537_v48  ;;  %v545_v60 = vand.u32 4294901760, %v544_v49  ;;  %v6543_v62 = vpack.c.bf16 %v491_v52, %v488_v50 }
  0x24   : > { %v657_v61 = vand.u32 4294901760, %v656_v51  ;;  %v6545_v63 = vsub.f32 %v408_v37, %v488_v50  ;;  %v663_v0 = vsub.f32 %v6483_v25, %v7810_v53  ;;  %v670_v2 = vsub.f32 %v6485_v26, %v7807_v54  ;;  %p6262_p12 = pnand %p6261_p11, %p6426_p5 }
  0x25   : > { %5721 = vmatpush3.bf16.msra.mxu0 %v6515_v45  ;;  %v5744_v1 = vpack.c.bf16 %v545_v60, %v538_v59  ;;  %v440_v3 = vand.u32 4294901760, %v392_v55  ;;  %v443_v4 = vand.u32 4294901760, %v393_v56  ;;  %v7806_v9 = vand.u32 4294901760, %v6489_v28 }
  0x26   : > { %v5742_v7 = vpack.c.bf16 %v657_v61, %v650_v57  ;;  %5723 = vmatprep.subr.bf16.mxu0 %v6543_v62  ;;  %v664_v8 = vand.u32 4294901760, %v663_v0  ;;  %v7803_v10 = vand.u32 4294901760, %v6502_v38  ;;  %v6566_v12 = vsub.f32 %v409_v42, %v491_v52  ;;  %v413_v57 = vld [vmem:[%s7784_s1 + $0xd8] sm:$0xff]  ;;  %p6263_p13 = pneg %p6262_p12 }
  0x27   : > { %v671_v13 = vand.u32 4294901760, %v670_v2  ;;  %v6568_v16 = vpack.c.bf16 %v443_v4, %v440_v3  ;;  %v6570_v17 = vsub.f32 %v392_v55, %v440_v3  ;;  %v551_v18 = vsub.f32 %v6489_v28, %v7806_v9 }
  0x28   : > { %5743 = vmatprep.subr.bf16.mxu1 %v5742_v7  ;;  %v558_v19 = vsub.f32 %v6502_v38, %v7803_v10  ;;  %v494_v23 = vand.u32 4294901760, %v410_v5  ;;  %v497_v24 = vand.u32 4294901760, %v411_v6  ;;  %v7802_v33 = vand.u32 4294901760, %v6506_v40 }
  0x29   : > { %5745 = vmatpush3.bf16.msra.mxu1 %v5744_v1  ;;  %v5746_v30 = vpack.c.bf16 %v671_v13, %v664_v8  ;;  %5725 = vmatpush3.bf16.msra.mxu0 %v6568_v16  ;;  %v7800_v34 = vand.u32 4294901760, %v6512_v43  ;;  %v446_v37 = vand.u32 4294901760, %v394_v11  ;;  %v6584_v42 = vsub.f32 %v393_v56, %v443_v4  ;;  %v412_v56 = vld [vmem:[%s7784_s1 + $0xd0] sm:$0xff] }
  0x2a   : > { %v552_v47 = vand.u32 4294901760, %v551_v18  ;;  %v559_v48 = vand.u32 4294901760, %v558_v19  ;;  %v6586_v49 = vpack.c.bf16 %v497_v24, %v494_v23  ;;  %v6588_v50 = vsub.f32 %v410_v5, %v494_v23  ;;  %v396_v1 = vld [vmem:[%s7784_s1 + $0x50] sm:$0xff]  ;;  %v397_v18 = vld [vmem:[%s7784_s1 + $0x58] sm:$0xff] }
  0x2b   : > { %5747 = vmatprep.subr.bf16.mxu1 %v5746_v30  ;;  %v677_v51 = vsub.f32 %v6506_v40, %v7802_v33  ;;  %v684_v52 = vsub.f32 %v6512_v43, %v7800_v34  ;;  %v449_v55 = vand.u32 4294901760, %v395_v29  ;;  %v6603_v60 = vsub.f32 %v411_v6, %v497_v24 }
  0x2c   : > { %v5748_v59 = vpack.c.bf16 %v559_v48, %v552_v47  ;;  %5727 = vmatprep.subr.bf16.mxu0 %v6586_v49  ;;  %v7799_v61 = vand.u32 4294901760, %v6517_v46  ;;  %v7797_v0 = vand.u32 4294901760, %v6541_v58  ;;  %v6612_v5 = vsub.f32 %v394_v11, %v446_v37 }
  0x2d   : > { %v678_v2 = vand.u32 4294901760, %v677_v51  ;;  %v685_v3 = vand.u32 4294901760, %v684_v52  ;;  %v6610_v4 = vpack.c.bf16 %v449_v55, %v446_v37  ;;  %v500_v8 = vand.u32 4294901760, %v412_v56 }
  0x2e   : > { %5749 = vmatpush3.bf16.msra.mxu1 %v5748_v59  ;;  %v565_v6 = vsub.f32 %v6517_v46, %v7799_v61  ;;  %v572_v7 = vsub.f32 %v6541_v58, %v7797_v0  ;;  %v503_v13 = vand.u32 4294901760, %v413_v57  ;;  %v7796_v11 = vand.u32 4294901760, %v6545_v63 }
  0x2f   : > { %v5750_v19 = vpack.c.bf16 %v685_v3, %v678_v2  ;;  %5729 = vmatpush3.bf16.msra.mxu0 %v6610_v4  ;;  %v7795_v23 = vand.u32 4294901760, %v6566_v12  ;;  %v452_v24 = vand.u32 4294901760, %v396_v1  ;;  %v6627_v30 = vsub.f32 %v395_v29, %v449_v55  ;;  %v414_v29 = vld [vmem:[%s7784_s1 + $0xe0] sm:$0xff]  ;;  %v415_v55 = vld [vmem:[%s7784_s1 + $0xe8] sm:$0xff] }
  0x30   : > { %v566_v37 = vand.u32 4294901760, %v565_v6  ;;  %v573_v47 = vand.u32 4294901760, %v572_v7  ;;  %v6629_v48 = vpack.c.bf16 %v503_v13, %v500_v8  ;;  %v6631_v51 = vsub.f32 %v412_v56, %v500_v8  ;;  %v398_v8 = vld [vmem:[%s7784_s1 + $0x60] sm:$0xff] }
  0x31   : > { %5751 = vmatprep.subr.bf16.mxu1 %v5750_v19  ;;  %v691_v52 = vsub.f32 %v6545_v63, %v7796_v11  ;;  %v698_v59 = vsub.f32 %v6566_v12, %v7795_v23  ;;  %v455_v2 = vand.u32 4294901760, %v397_v18  ;;  %v6646_v3 = vsub.f32 %v413_v57, %v503_v13 }
  0x32   : > { %v5752_v56 = vpack.c.bf16 %v573_v47, %v566_v37  ;;  %5731 = vmatprep.subr.bf16.mxu0 %v6629_v48  ;;  %v7798_v6 = vand.u32 4294901760, %v6570_v17  ;;  %v7801_v7 = vand.u32 4294901760, %v6584_v42  ;;  %v6655_v0 = vsub.f32 %v396_v1, %v452_v24 }
  0x33   : > { %v692_v19 = vand.u32 4294901760, %v691_v52  ;;  %v699_v23 = vand.u32 4294901760, %v698_v59  ;;  %v6653_v11 = vpack.c.bf16 %v455_v2, %v452_v24  ;;  %v506_v37 = vand.u32 4294901760, %v414_v29  ;;  %v399_v52 = vld [vmem:[%s7784_s1 + $0x68] sm:$0xff] }
  0x34   : > { %5753 = vmatpush3.bf16.msra.mxu1 %v5752_v56  ;;  %v579_v57 = vsub.f32 %v6570_v17, %v7798_v6  ;;  %v586_v13 = vsub.f32 %v6584_v42, %v7801_v7  ;;  %v509_v47 = vand.u32 4294901760, %v415_v55  ;;  %v7805_v24 = vand.u32 4294901760, %v6588_v50 }
  0x35   : > { %v5754_v1 = vpack.c.bf16 %v699_v23, %v692_v19  ;;  %5733 = vmatpush3.bf16.msra.mxu0 %v6653_v11  ;;  %v7804_v59 = vand.u32 4294901760, %v6603_v60  ;;  %v458_v56 = vand.u32 4294901760, %v398_v8  ;;  %v6674_v6 = vsub.f32 %v397_v18, %v455_v2  ;;  %v416_v18 = vld [vmem:[%s7784_s1 + $0xf0] sm:$0xff]  ;;  %v417_v2 = vld [vmem:[%s7784_s1 + $0xf8] sm:$0xff] }
  0x36   : > { %v580_v61 = vand.u32 4294901760, %v579_v57  ;;  %v587_v34 = vand.u32 4294901760, %v586_v13  ;;  %v6676_v7 = vpack.c.bf16 %v509_v47, %v506_v37  ;;  %v6678_v33 = vsub.f32 %v414_v29, %v506_v37 }
  0x37   : > { %5755 = vmatprep.subr.bf16.mxu1 %v5754_v1  ;;  %v705_v23 = vsub.f32 %v6588_v50, %v7805_v24  ;;  %v712_v19 = vsub.f32 %v6603_v60, %v7804_v59  ;;  %v461_v10 = vand.u32 4294901760, %v399_v52  ;;  %v6694_v57 = vsub.f32 %v415_v55, %v509_v47  ;;  %v400_v1 = vld [vmem:[%s7784_s1 + $0x70] sm:$0xff] }
  0x38   : > { %7886 = vst [vmem:[#allocation5_spill] sm:$0xff] %v6676_v7  ;;  %v5756_v29 = vpack.c.bf16 %v587_v34, %v580_v61  ;;  %5735 = vmatprep.subr.bf16.mxu0 %v6676_v7  ;;  %v7809_v13 = vand.u32 4294901760, %v6612_v5  ;;  %v7808_v37 = vand.u32 4294901760, %v6627_v30  ;;  %v6703_v54 = vsub.f32 %v398_v8, %v458_v56 }
  0x39   : > { %v706_v59 = vand.u32 4294901760, %v705_v23  ;;  %v713_v24 = vand.u32 4294901760, %v712_v19  ;;  %v6701_v9 = vpack.c.bf16 %v461_v10, %v458_v56  ;;  %v512_v55 = vand.u32 4294901760, %v416_v18  ;;  %v401_v23 = vld [vmem:[%s7784_s1 + $0x78] sm:$0xff] }
  0x3a   : > { %5757 = vmatpush3.bf16.msra.mxu1 %v5756_v29  ;;  %v593_v34 = vsub.f32 %v6612_v5, %v7809_v13  ;;  %v600_v61 = vsub.f32 %v6627_v30, %v7808_v37  ;;  %v515_v47 = vand.u32 4294901760, %v417_v2  ;;  %v7819_v56 = vand.u32 4294901760, %v6631_v51 }
  0x3b   : > { %7887 = vst [vmem:[#allocation6_spill] sm:$0xff] %v6701_v9  ;;  %v5758_v8 = vpack.c.bf16 %v713_v24, %v706_v59  ;;  %5737 = vmatpush3.bf16.msra.mxu0 %v6701_v9  ;;  %v7817_v19 = vand.u32 4294901760, %v6646_v3  ;;  %v464_v29 = vand.u32 4294901760, %v400_v1  ;;  %v6722_v37 = vsub.f32 %v399_v52, %v461_v10 }
  0x3c   : > { %v594_v13 = vand.u32 4294901760, %v593_v34  ;;  %v601_v53 = vand.u32 4294901760, %v600_v61  ;;  %v6724_v36 = vpack.c.bf16 %v515_v47, %v512_v55  ;;  %v6726_v35 = vsub.f32 %v416_v18, %v512_v55 }
  0x3d   : > { %5759 = vmatprep.subr.bf16.mxu1 %v5758_v8  ;;  %v719_v24 = vsub.f32 %v6631_v51, %v7819_v56  ;;  %v726_v59 = vsub.f32 %v6646_v3, %v7817_v19  ;;  %v467_v44 = vand.u32 4294901760, %v401_v23  ;;  %v6736_v10 = vsub.f32 %v417_v2, %v515_v47 }
  0x3e   : > { %7889 = vst [vmem:[#allocation7_spill] sm:$0xff] %v6724_v36  ;;  %v5760_v9 = vpack.c.bf16 %v601_v53, %v594_v13  ;;  %5739 = vmatprep.subr.bf16.mxu0 %v6724_v36  ;;  %v7818_v52 = vand.u32 4294901760, %v6655_v0  ;;  %v7820_v18 = vand.u32 4294901760, %v6674_v6  ;;  %v6742_v8 = vsub.f32 %v400_v1, %v464_v29 }
  0x3f   : > { %v720_v34 = vand.u32 4294901760, %v719_v24  ;;  %v727_v61 = vand.u32 4294901760, %v726_v59  ;;  %v6740_v55 = vpack.c.bf16 %v467_v44, %v464_v29  ;;  %v419_v2 = vcombine.high %v385_v41, %v385_v41 }
  0x40   : > { %5761 = vmatpush3.bf16.msra.mxu1 %v5760_v9  ;;  %v607_v19 = vsub.f32 %v6655_v0, %v7818_v52  ;;  %v614_v53 = vsub.f32 %v6674_v6, %v7820_v18  ;;  %v6750_v13 = vand.u32 4294901760, %v385_v41  ;;  %v7823_v24 = vand.u32 4294901760, %v6678_v33 }
  0x41   : > { %7890 = vst [vmem:[#allocation8_spill] sm:$0xff] %v6740_v55  ;;  %v5762_v47 = vpack.c.bf16 %v727_v61, %v720_v34  ;;  %5741 = vmatpush3.bf16.msra.mxu0 %v6740_v55  ;;  %v7826_v1 = vand.u32 4294901760, %v6694_v57  ;;  %v5774_v9 = vpack.c.bf16 %v6494_v32, %v6492_v31  ;;  %v6757_v52 = vand.u32 4294901760, %v419_v2 }
  0x42   : > { %v608_v29 = vand.u32 4294901760, %v607_v19  ;;  %v615_v59 = vand.u32 4294901760, %v614_v53  ;;  %v6760_v56 = vsub.f32 %v385_v41, %v6750_v13  ;;  %v733_v34 = vsub.f32 %v6678_v33, %v7823_v24 }
  0x43   : > { %7891 = vst [vmem:[#allocation9_spill] sm:$0xff] %v6757_v52  ;;  %5763 = vmatprep.subr.bf16.mxu1 %v5762_v47  ;;  %v740_v61 = vsub.f32 %v6694_v57, %v7826_v1  ;;  %5775 = vmatprep.subr.bf16.mxu0 %v5774_v9  ;;  %v7827_v18 = vand.u32 4294901760, %v6703_v54  ;;  %v7828_v19 = vand.u32 4294901760, %v6722_v37  ;;  %v6770_v53 = vsub.f32 %v401_v23, %v467_v44 }
  0x44   : > { %7892 = vst [vmem:[#allocation10_spill] sm:$0xff] %v6760_v56  ;;  %v5764_v55 = vpack.c.bf16 %v615_v59, %v608_v29  ;;  %v6773_v41 = vsub.f32 %v419_v2, %v6757_v52  ;;  %v6776_v47 = vand.u32 4294901760, %v6760_v56  ;;  %758 = vmatprep.mubr.f32.mxu1 %v6757_v52  ;;  %v734_v24 = vand.u32 4294901760, %v733_v34 }
  0x45   : > { %v741_v36 = vand.u32 4294901760, %v740_v61  ;;  %v621_v9 = vsub.f32 %v6703_v54, %v7827_v18  ;;  %v628_v44 = vsub.f32 %v6722_v37, %v7828_v19  ;;  %v7837_v29 = vand.u32 4294901760, %v6726_v35 }
  0x46   : > { %7893 = vst [vmem:[#allocation11_spill] sm:$0xff] %v6773_v41  ;;  %7894 = vst [vmem:[#allocation12_spill] sm:$0xff] %v6776_v47  ;;  %5765 = vmatpush3.bf16.msra.mxu1 %v5764_v55  ;;  %v6786_v23 = vand.u32 4294901760, %v6773_v41  ;;  %v526_v2 = vsub.f32 %v6760_v56, %v6776_v47  ;;  %v7840_v59 = vand.u32 4294901760, %v6736_v10  ;;  %v7839_v56 = vand.u32 4294901760, %v6742_v8 }
  0x47   : > { %v5766_v34 = vpack.c.bf16 %v741_v36, %v734_v24  ;;  %v622_v61 = vand.u32 4294901760, %v621_v9  ;;  %v629_v1 = vand.u32 4294901760, %v628_v44  ;;  %v747_v55 = vsub.f32 %v6726_v35, %v7837_v29 }
  0x48   : > { %7895 = vst [vmem:[#allocation13_spill] sm:$0xff] %v6786_v23  ;;  %v520_v18 = vsub.f32 %v6773_v41, %v6786_v23  ;;  %v754_v19 = vsub.f32 %v6736_v10, %v7840_v59  ;;  %v6800_v47 = vand.u32 4294901760, %v526_v2  ;;  %v7838_v36 = vand.u32 4294901760, %v6770_v53 }
  0x49   : > { %5767 = vmatprep.subr.bf16.mxu1 %v5766_v34  ;;  %v5768_v52 = vpack.c.bf16 %v629_v1, %v622_v61  ;;  %v5776_v9 = vpack.c.bf16 %v6472_v21, %v6462_v15  ;;  %v748_v44 = vand.u32 4294901760, %v747_v55  ;;  %v5778_v29 = vpack.c.bf16 %v6485_v26, %v6483_v25 }
  0x4a   : > { %v6804_v24 = vand.u32 4294901760, %v520_v18  ;;  %v755_v7 = vand.u32 4294901760, %v754_v19  ;;  %v635_v2 = vsub.f32 %v6742_v8, %v7839_v56  ;;  %v642_v1 = vsub.f32 %v6770_v53, %v7838_v36 }
  0x4b   : > { %5769 = vmatpush3.bf16.msra.mxu1 %v5768_v52  ;;  %v5780_v52 = vpack.c.bf16 %v6502_v38, %v6489_v28  ;;  %v5782_v19 = vpack.c.bf16 %v6512_v43, %v6506_v40  ;;  %v5784_v36 = vpack.c.bf16 %v6541_v58, %v6517_v46  ;;  %v7900_v56 = vand.u32 4294901760, %v6483_v25 }
  0x4c   : > { %522 = vmatprep.mubr.f32.mxu0 %v6804_v24  ;;  %v5770_v18 = vpack.c.bf16 %v755_v7, %v748_v44  ;;  %v636_v34 = vand.u32 4294901760, %v635_v2  ;;  %v643_v61 = vand.u32 4294901760, %v642_v1  ;;  %v7896_v7 = vand.u32 4294901760, %v6492_v31 }
  0x4d   : > { %528 = vmatmul.mubr.f32.vlgmr.msra.gmra.mrb[0].mxu0 %v6800_v47  ;;  %v7897_v44 = vand.u32 4294901760, %v6494_v32  ;;  %v7899_v1 = vand.u32 4294901760, %v6472_v21  ;;  %v7903_v59 = vand.u32 4294901760, %v6502_v38  ;;  %v7904_v31 = vand.u32 4294901760, %v6506_v40 }
  0x4e   : > { %5777 = vmatpush3.bf16.msra.mxu0 %v5776_v9  ;;  %5771 = vmatprep.subr.bf16.mxu1 %v5770_v18  ;;  %v5772_v55 = vpack.c.bf16 %v643_v61, %v636_v34  ;;  %v7898_v9 = vand.u32 4294901760, %v6462_v15  ;;  %v7902_v61 = vand.u32 4294901760, %v6489_v28  ;;  %v7905_v32 = vand.u32 4294901760, %v6512_v43 }
  0x4f   : > { %5779 = vmatprep.subr.bf16.mxu0 %v5778_v29  ;;  %895 = vmatprep.mubr.f32.mxu0 %v6773_v41  ;;  %v5838_v2 = vpack.c.bf16 %v7897_v44, %v7896_v7  ;;  %v7901_v29 = vand.u32 4294901760, %v6485_v26  ;;  %v7906_v15 = vand.u32 4294901760, %v6517_v46  ;;  %v7907_v21 = vand.u32 4294901760, %v6541_v58 }
  0x50   : > { %v5840_v18 = vpack.c.bf16 %v7899_v1, %v7898_v9  ;;  %v6841_v41 = vpack.c.bf16 %v7903_v59, %v7902_v61  ;;  %v6847_v7 = vpack.c.bf16 %v7905_v32, %v7904_v31  ;;  %5773 = vmatpush3.bf16.msra.mxu1 %v5772_v55  ;;  %v7908_v26 = vand.u32 4294901760, %v6545_v63 }
  0x51   : > { %v5842_v34 = vpack.c.bf16 %v7901_v29, %v7900_v56  ;;  %v6853_v25 = vpack.c.bf16 %v7907_v21, %v7906_v15  ;;  %v7909_v28 = vand.u32 4294901760, %v6566_v12  ;;  %v7910_v56 = vand.u32 4294901760, %v6570_v17  ;;  %5807 = vmatprep.subr.bf16.mxu1 %v6460_v14 }
  0x52   : > { %v7911_v40 = vand.u32 4294901760, %v6584_v42  ;;  %v7912_v59 = vand.u32 4294901760, %v6588_v50  ;;  %v7913_v46 = vand.u32 4294901760, %v6603_v60  ;;  %5781 = vmatpush3.bf16.msra.mxu0 %v5780_v52  ;;  %v7914_v58 = vand.u32 4294901760, %v6612_v5 }
  0x53   : > { %v6859_v38 = vpack.c.bf16 %v7909_v28, %v7908_v26  ;;  %v7915_v44 = vand.u32 4294901760, %v6627_v30  ;;  %v7916_v1 = vand.u32 4294901760, %v6631_v51  ;;  %v7917_v29 = vand.u32 4294901760, %v6646_v3  ;;  %5783 = vmatprep.subr.bf16.mxu0 %v5782_v19  ;;  %760 = vmatmul.mubr.f32.vlgmr.msra.gmra.mrb[0].mxu1 %v6750_v13 }
  0x54   : > { %v6865_v43 = vpack.c.bf16 %v7911_v40, %v7910_v56  ;;  %v6871_v55 = vpack.c.bf16 %v7913_v46, %v7912_v59  ;;  %v7918_v31 = vand.u32 4294901760, %v6655_v0  ;;  %v7919_v32 = vand.u32 4294901760, %v6674_v6  ;;  %5809 = vmatpush3.bf16.msra.mxu1 %v6470_v20  ;;  %1002 = vmatprep.mubr.f32.mxu1 %v6786_v23  ;;  %v7926_v56 = vld [vmem:[#allocation9_spill] sm:$0xff]  ;;  %v7927_v46 = vld [vmem:[#allocation8_spill] sm:$0xff] }
  0x55   : > { %v6878_v9 = vpack.c.bf16 %v7915_v44, %v7914_v58  ;;  %v6884_v61 = vpack.c.bf16 %v7917_v29, %v7916_v1  ;;  %v5786_v52 = vpack.c.bf16 %v6566_v12, %v6545_v63  ;;  %v7920_v21 = vand.u32 4294901760, %v6703_v54  ;;  %5811 = vmatprep.subr.bf16.mxu1 %v6474_v22 }
  0x56   : > { %v6890_v15 = vpack.c.bf16 %v7919_v32, %v7918_v31  ;;  %v7921_v26 = vand.u32 4294901760, %v6722_v37  ;;  %5785 = vmatpush3.bf16.msra.mxu0 %v5784_v36  ;;  %v5788_v19 = vpack.c.bf16 %v6584_v42, %v6570_v17  ;;  %v5790_v63 = vpack.c.bf16 %v6603_v60, %v6588_v50  ;;  %v7928_v31 = vld [vmem:[#allocation12_spill] sm:$0xff] }
  0x57   : > { %5787 = vmatprep.subr.bf16.mxu0 %v5786_v52  ;;  %v5792_v12 = vpack.c.bf16 %v6627_v30, %v6612_v5  ;;  %v5794_v36 = vpack.c.bf16 %v6646_v3, %v6631_v51  ;;  %v5796_v17 = vpack.c.bf16 %v6674_v6, %v6655_v0  ;;  %v5798_v42 = vpack.c.bf16 %v6694_v57, %v6678_v33  ;;  %v7922_v5 = vld [vmem:[#allocation5_spill] sm:$0xff]  ;;  %v1301_v30 = vld [vmem:[%s7785_s2 + $0x88] sm:$0xff]  ;;  %v7923_v51 = vld [vmem:[#allocation10_spill] sm:$0xff] }
  0x58   : > { %v6898_v28 = vpack.c.bf16 %v7921_v26, %v7920_v21  ;;  %5813 = vmatpush3.bf16.msra.mxu1 %v6487_v27  ;;  %v5800_v50 = vpack.c.bf16 %v6722_v37, %v6703_v54  ;;  %v5802_v60 = vpack.c.bf16 %v6736_v10, %v6726_v35  ;;  %v5804_v0 = vpack.c.bf16 %v6770_v53, %v6742_v8  ;;  %v1300_v54 = vld [vmem:[%s7785_s2 + $0x80] sm:$0xff]  ;;  %v7924_v3 = vld [vmem:[#allocation6_spill] sm:$0xff] }
  0x59   : > { %5815 = vmatprep.subr.bf16.mxu1 %v6504_v39  ;;  %v7925_v6 = vld [vmem:[#allocation7_spill] sm:$0xff]  ;;  %v1365_v40 = vand.u32 4294901760, %v1300_v54  ;;  %v1368_v59 = vand.u32 4294901760, %v1301_v30  ;;  %vm2186_vm1 = vcmask 31744   ;;  %vm2190_vm2 = vcmask 1043456  }
  0x5a   : > { %5789 = vmatpush3.bf16.msra.mxu0 %v5788_v19  ;;  %v1284_v37 = vld [vmem:[%s7785_s2] sm:$0xff]  ;;  %vm3106_vm3 = vcmask 64512   ;;  %vm4028_vm4 = vcmask 130048  }
  0x5b   : > { %5791 = vmatprep.subr.bf16.mxu0 %v5790_v63  ;;  %v1317_v58 = vand.u32 4294901760, %v1284_v37  ;;  %v6958_v1 = vsub.f32 %v1300_v54, %v1365_v40  ;;  %v6960_v29 = vsub.f32 %v1301_v30, %v1368_v59  ;;  %v7933_v30 = vand.u32 4294901760, %v6742_v8  ;;  %v1306_v8 = vld [vmem:[%s7785_s2 + $0xb0] sm:$0xff] }
  0x5c   : > { %5817 = vmatpush3.bf16.msra.mxu1 %v6515_v45 }
  0x5d   : > { %5819 = vmatprep.subr.bf16.mxu1 %v6543_v62  ;;  %v6970_v32 = vsub.f32 %v1284_v37, %v1317_v58  ;;  %v7849_v63 = vand.u32 4294901760, %v6958_v1  ;;  %v7934_v37 = vand.u32 4294901760, %v6770_v53 }
  0x5e   : > { %5793 = vmatpush3.bf16.msra.mxu0 %v5792_v12  ;;  %v7848_v12 = vand.u32 4294901760, %v6960_v29 }
  0x5f   : > { %5795 = vmatprep.subr.bf16.mxu0 %v5794_v36  ;;  %v7929_v36 = vand.u32 4294901760, %v6678_v33  ;;  %v1289_v33 = vld [vmem:[%s7785_s2 + $0x28] sm:$0xff] }
  0x60   : > { %5821 = vmatpush3.bf16.msra.mxu1 %v6568_v16 }
  0x61   : > { %5823 = vmatprep.subr.bf16.mxu1 %v6586_v49 }
  0x62   : > { %5797 = vmatpush3.bf16.msra.mxu0 %v5796_v17  ;;  %v7930_v17 = vand.u32 4294901760, %v6694_v57  ;;  %v7843_v57 = vand.u32 4294901760, %v6970_v32 }
  0x63   : > { %5799 = vmatprep.subr.bf16.mxu0 %v5798_v42 }
  0x64   : > { %5825 = vmatpush3.bf16.msra.mxu1 %v6610_v4  ;;  %v5862_v42 = vpack.c.bf16 %v7930_v17, %v7929_v36  ;;  %v1307_v36 = vld [vmem:[%s7785_s2 + $0xb8] sm:$0xff] }
  0x65   : > { %5827 = vmatprep.subr.bf16.mxu1 %v6629_v48 }
  0x66   : > { %5801 = vmatpush3.bf16.msra.mxu0 %v5800_v50  ;;  %v1288_v50 = vld [vmem:[%s7785_s2 + $0x20] sm:$0xff] }
  0x67   : > { %5803 = vmatprep.subr.bf16.mxu0 %v5802_v60  ;;  %v7931_v60 = vand.u32 4294901760, %v6726_v35  ;;  %v1544_v35 = vsub.f32 %v6958_v1, %v7849_v63 }
  0x68   : > { %5829 = vmatpush3.bf16.msra.mxu1 %v6653_v11 }
  0x69   : > { %5831 = vmatprep.subr.bf16.mxu1 %v7922_v5 }
  0x6a   : > { %5805 = vmatpush3.bf16.msra.mxu0 %v5804_v0  ;;  %v7932_v0 = vand.u32 4294901760, %v6736_v10  ;;  %v1551_v10 = vsub.f32 %v6960_v29, %v7848_v12 }
  0x6b   : > { %5839 = vmatprep.subr.bf16.mxu0 %v5838_v2  ;;  %v1285_v2 = vld [vmem:[%s7785_s2 + $0x8] sm:$0xff] }
  0x6c   : > { %5833 = vmatpush3.bf16.msra.mxu1 %v7924_v3  ;;  %v1320_v44 = vand.u32 4294901760, %v1285_v2  ;;  %v7009_v54 = vpack.c.bf16 %v7932_v0, %v7931_v60  ;;  %v1383_v0 = vand.u32 4294901760, %v1306_v8 }
  0x6d   : > { %898 = vmatmul.mubr.f32.vlgmr.msra.gmra.mrb[2].mxu0 %v7923_v51  ;;  %5835 = vmatprep.subr.bf16.mxu1 %v7925_v6 }
  0x6e   : > { %5841 = vmatpush3.bf16.msra.mxu0 %v5840_v18  ;;  %1172 = vmatprep.mubr.f32.mxu0 %v7926_v56  ;;  %v1302_v18 = vld [vmem:[%s7785_s2 + $0x90] sm:$0xff]  ;;  %v6972_v52 = vsub.f32 %v1285_v2, %v1320_v44  ;;  %v7015_v2 = vpack.c.bf16 %v7934_v37, %v7933_v30  ;;  %v7033_v53 = vpack.c.bf16 %v1320_v44, %v1317_v58  ;;  %v1545_v30 = vand.u32 4294901760, %v1544_v35 }
  0x6f   : > { %5843 = vmatprep.subr.bf16.mxu0 %v5842_v34  ;;  %v1303_v34 = vld [vmem:[%s7785_s2 + $0x98] sm:$0xff]  ;;  %v1552_v37 = vand.u32 4294901760, %v1551_v10 }
  0x70   : > { %5837 = vmatpush3.bf16.msra.mxu1 %v7927_v46  ;;  %v1374_v21 = vand.u32 4294901760, %v1303_v34 }
  0x71   : > { %5871 = vmatprep.subr.bf16.mxu1 %v6460_v14  ;;  %v1286_v14 = vld [vmem:[%s7785_s2 + $0x10] sm:$0xff] }
  0x72   : > { %5845 = vmatpush3.bf16.msra.mxu0 %v6841_v41  ;;  %v1287_v41 = vld [vmem:[%s7785_s2 + $0x18] sm:$0xff]  ;;  %v1323_v26 = vand.u32 4294901760, %v1286_v14 }
  0x73   : > { %5847 = vmatprep.subr.bf16.mxu0 %v6847_v7  ;;  %1006 = vmatmul.mubr.f32.vlgmr.msra.gmra.mrb[2].mxu1 %v7928_v31  ;;  %v1371_v7 = vand.u32 4294901760, %v1302_v18  ;;  %v1326_v19 = vand.u32 4294901760, %v1287_v41 }
  0x74   : > { %5873 = vmatpush3.bf16.msra.mxu1 %v6470_v20  ;;  %1276 = vmatprep.mubr.f32.mxu1 %v7926_v56  ;;  %v1304_v20 = vld [vmem:[%s7785_s2 + $0xa0] sm:$0xff] }
  0x75   : > { %5875 = vmatprep.subr.bf16.mxu1 %v6474_v22  ;;  %v6988_v22 = vsub.f32 %v1302_v18, %v1371_v7  ;;  %v7017_v18 = vpack.c.bf16 %v1368_v59, %v1365_v40  ;;  %v1332_v59 = vand.u32 4294901760, %v1289_v33  ;;  %v7051_v17 = vpack.c.bf16 %v1326_v19, %v1323_v26 }
  0x76   : > { %5849 = vmatpush3.bf16.msra.mxu0 %v6853_v25  ;;  %v6990_v25 = vsub.f32 %v1303_v34, %v1374_v21  ;;  %v1377_v34 = vand.u32 4294901760, %v1304_v20 }
  0x77   : > { %5851 = vmatprep.subr.bf16.mxu0 %v6859_v38  ;;  %v1305_v38 = vld [vmem:[%s7785_s2 + $0xa8] sm:$0xff]  ;;  %v7844_v58 = vand.u32 4294901760, %v6988_v22  ;;  %7936 = vst [vmem:[#allocation6_spill] sm:$0xff] %v7051_v17 }
  0x78   : > { %5877 = vmatpush3.bf16.msra.mxu1 %v6487_v27  ;;  %v7842_v27 = vand.u32 4294901760, %v6972_v52  ;;  %v1380_v40 = vand.u32 4294901760, %v1305_v38  ;;  %v7847_v44 = vand.u32 4294901760, %v6990_v25  ;;  %v7053_v60 = vsub.f32 %v1304_v20, %v1377_v34 }
  0x79   : > { %5879 = vmatprep.subr.bf16.mxu1 %v6504_v39  ;;  %v7022_v39 = vsub.f32 %v1287_v41, %v1326_v19  ;;  %v1558_v10 = vsub.f32 %v6988_v22, %v7844_v58  ;;  %v7088_v58 = vsub.f32 %v1306_v8, %v1383_v0 }
  0x7a   : > { %5853 = vmatpush3.bf16.msra.mxu0 %v6865_v43  ;;  %v7020_v43 = vsub.f32 %v1286_v14, %v1323_v26  ;;  %v1432_v14 = vsub.f32 %v6970_v32, %v7843_v57  ;;  %v1439_v41 = vsub.f32 %v6972_v52, %v7842_v27  ;;  %v1290_v27 = vld [vmem:[%s7785_s2 + $0x30] sm:$0xff]  ;;  %v7066_v26 = vsub.f32 %v1305_v38, %v1380_v40 }
  0x7b   : > { %5855 = vmatprep.subr.bf16.mxu0 %v6871_v55  ;;  %v1329_v55 = vand.u32 4294901760, %v1288_v50  ;;  %v1565_v57 = vsub.f32 %v6990_v25, %v7847_v44 }
  0x7c   : > { %5881 = vmatpush3.bf16.msra.mxu1 %v6515_v45  ;;  %v7049_v45 = vpack.c.bf16 %v1374_v21, %v1371_v7  ;;  %v7845_v7 = vand.u32 4294901760, %v7022_v39  ;;  %v7064_v21 = vpack.c.bf16 %v1380_v40, %v1377_v34  ;;  %v1433_v20 = vand.u32 4294901760, %v1432_v14  ;;  %v1308_v14 = vld [vmem:[%s7785_s2 + $0xc0] sm:$0xff] }
  0x7d   : > { %5883 = vmatprep.subr.bf16.mxu1 %v6543_v62  ;;  %v7846_v62 = vand.u32 4294901760, %v7020_v43  ;;  %v7068_v19 = vpack.c.bf16 %v1332_v59, %v1329_v55  ;;  %v1440_v35 = vand.u32 4294901760, %v1439_v41  ;;  %v7079_v38 = vsub.f32 %v1288_v50, %v1329_v55  ;;  %v1309_v50 = vld [vmem:[%s7785_s2 + $0xc8] sm:$0xff] }
  0x7e   : > { %5857 = vmatpush3.bf16.msra.mxu0 %v6878_v9  ;;  %7935 = vst [vmem:[#allocation5_spill] sm:$0xff] %v7049_v45  ;;  %v1291_v9 = vld [vmem:[%s7785_s2 + $0x38] sm:$0xff]  ;;  %7937 = vst [vmem:[#allocation7_spill] sm:$0xff] %v7064_v21  ;;  %v7081_v34 = vsub.f32 %v1289_v33, %v1332_v59  ;;  %v1335_v40 = vand.u32 4294901760, %v1290_v27  ;;  %v7086_v41 = vpack.c.bf16 %v1552_v37, %v1545_v30  ;;  %v7851_v8 = vand.u32 4294901760, %v7066_v26  ;;  %v1292_v59 = vld [vmem:[%s7785_s2 + $0x40] sm:$0xff] }
  0x7f   : > { %5859 = vmatprep.subr.bf16.mxu0 %v6884_v61  ;;  %7938 = vst [vmem:[#allocation8_spill] sm:$0xff] %v7068_v19  ;;  %v1386_v61 = vand.u32 4294901760, %v1307_v36  ;;  %v7109_v30 = vpack.c.bf16 %v1440_v35, %v1433_v20  ;;  %v1559_v37 = vand.u32 4294901760, %v1558_v10  ;;  %v7850_v44 = vand.u32 4294901760, %v7079_v38 }
  0x80   : > { %5885 = vmatpush3.bf16.msra.mxu1 %v6568_v16  ;;  %v1338_v16 = vand.u32 4294901760, %v1291_v9  ;;  %v7121_v20 = vsub.f32 %v1290_v27, %v1335_v40  ;;  %v1341_v10 = vand.u32 4294901760, %v1292_v59 }
  0x81   : > { %5887 = vmatprep.subr.bf16.mxu1 %v6586_v49  ;;  %v1453_v49 = vsub.f32 %v7022_v39, %v7845_v7  ;;  %v7099_v33 = vpack.c.bf16 %v1386_v61, %v1383_v0  ;;  %v7101_v55 = vsub.f32 %v1307_v36, %v1386_v61  ;;  %v1566_v7 = vand.u32 4294901760, %v1565_v57  ;;  %v1293_v36 = vld [vmem:[%s7785_s2 + $0x48] sm:$0xff] }
  0x82   : > { %5861 = vmatpush3.bf16.msra.mxu0 %v6890_v15  ;;  %v1446_v15 = vsub.f32 %v7020_v43, %v7846_v62  ;;  %v1389_v62 = vand.u32 4294901760, %v1308_v14  ;;  %v7116_v0 = vpack.c.bf16 %v1338_v16, %v1335_v40  ;;  %v1392_v61 = vand.u32 4294901760, %v1309_v50 }
  0x83   : > { %5863 = vmatprep.subr.bf16.mxu0 %v5862_v42  ;;  %7939 = vst [vmem:[#allocation14_spill] sm:$0xff] %v7099_v33  ;;  %v7852_v42 = vand.u32 4294901760, %v7053_v60  ;;  %v1454_v35 = vand.u32 4294901760, %v1453_v49  ;;  %v7123_v12 = vsub.f32 %v1291_v9, %v1338_v16  ;;  %v1344_v63 = vand.u32 4294901760, %v1293_v36  ;;  %v1311_v9 = vld [vmem:[%s7785_s2 + $0xd8] sm:$0xff] }
  0x84   : > { %5889 = vmatpush3.bf16.msra.mxu1 %v6610_v4  ;;  %7940 = vst [vmem:[#allocation15_spill] sm:$0xff] %v7116_v0  ;;  %v7853_v4 = vand.u32 4294901760, %v7081_v34  ;;  %v1447_v57 = vand.u32 4294901760, %v1446_v15  ;;  %v7135_v27 = vpack.c.bf16 %v1566_v7, %v1559_v37  ;;  %v7137_v40 = vsub.f32 %v1308_v14, %v1389_v62  ;;  %v1294_v14 = vld [vmem:[%s7785_s2 + $0x50] sm:$0xff] }
  0x85   : > { %5891 = vmatprep.subr.bf16.mxu1 %v6629_v48  ;;  %v1572_v48 = vsub.f32 %v7053_v60, %v7852_v42  ;;  %v7854_v16 = vand.u32 4294901760, %v7088_v58  ;;  %v7146_v49 = vpack.c.bf16 %v1392_v61, %v1389_v62  ;;  %v1398_v15 = vand.u32 4294901760, %v1311_v9 }
  0x86   : > { %5865 = vmatpush3.bf16.msra.mxu0 %v6898_v28  ;;  %v1579_v28 = vsub.f32 %v7066_v26, %v7851_v8  ;;  %7941 = vst [vmem:[#allocation16_spill] sm:$0xff] %v7137_v40  ;;  %v1467_v7 = vsub.f32 %v7081_v34, %v7853_v4  ;;  %v7158_v37 = vpack.c.bf16 %v1454_v35, %v1447_v57  ;;  %v1347_v57 = vand.u32 4294901760, %v1294_v14  ;;  %v7194_v35 = vld [vmem:[%s7785_s2 + $0xe8] sm:$0xff] }
  0x87   : > { %5867 = vmatprep.subr.bf16.mxu0 %v7009_v54  ;;  %v1310_v54 = vld [vmem:[%s7785_s2 + $0xd0] sm:$0xff]  ;;  %v1573_v8 = vand.u32 4294901760, %v1572_v48  ;;  %v7167_v4 = vpack.c.bf16 %v1344_v63, %v1341_v10  ;;  %v7948_v23 = vand.u32 4294901760, %v7121_v20 }
  0x88   : > { %5893 = vmatpush3.bf16.msra.mxu1 %v6653_v11  ;;  %v1460_v11 = vsub.f32 %v7079_v38, %v7850_v44  ;;  %v1395_v62 = vand.u32 4294901760, %v1310_v54  ;;  %v1295_v44 = vld [vmem:[%s7785_s2 + $0x58] sm:$0xff]  ;;  %v1580_v42 = vand.u32 4294901760, %v1579_v28  ;;  %v1468_v48 = vand.u32 4294901760, %v1467_v7 }
  0x89   : > { %5895 = vmatprep.subr.bf16.mxu1 %v7922_v5  ;;  %v7162_v5 = vsub.f32 %v1292_v59, %v1341_v10  ;;  %v7944_v59 = vand.u32 4294901760, %v7101_v55  ;;  %v7181_v10 = vld [vmem:[%s7785_s2 + $0xe0] sm:$0xff]  ;;  %v1350_v28 = vand.u32 4294901760, %v1295_v44  ;;  %v1474_v51 = vsub.f32 %v7121_v20, %v7948_v23  ;;  %v7226_v23 = vld [vmem:[%s7785_s2 + $0x68] sm:$0xff] }
  0x8a   : > { %5869 = vmatpush3.bf16.msra.mxu0 %v7015_v2  ;;  %v7160_v2 = vsub.f32 %v1309_v50, %v1392_v61  ;;  %v1586_v50 = vsub.f32 %v7088_v58, %v7854_v16  ;;  %v7189_v31 = vsub.f32 %v1310_v54, %v1395_v62  ;;  %v7199_v7 = vpack.c.bf16 %v1398_v15, %v1395_v62 }
  0x8b   : > { %5903 = vmatprep.subr.bf16.mxu0 %v7017_v18  ;;  %7943 = vst [vmem:[#allocation18_spill] sm:$0xff] %v7162_v5  ;;  %v1593_v61 = vsub.f32 %v7101_v55, %v7944_v59  ;;  %v7187_v59 = vsub.f32 %v1293_v36, %v1344_v63  ;;  %v7201_v16 = vsub.f32 %v1311_v9, %v1398_v15  ;;  %v7861_v63 = vand.u32 4294901760, %v7181_v10  ;;  %v7221_v15 = vld [vmem:[%s7785_s2 + $0x60] sm:$0xff] }
  0x8c   : > { %7942 = vst [vmem:[#allocation17_spill] sm:$0xff] %v7160_v2  ;;  %5897 = vmatpush3.bf16.msra.mxu1 %v7924_v3  ;;  %v1461_v3 = vand.u32 4294901760, %v1460_v11  ;;  %7946 = vst [vmem:[#allocation20_spill] sm:$0xff] %v7189_v31  ;;  %v5942_v11 = vpack.c.bf16 %v1580_v42, %v1573_v8  ;;  %v1587_v36 = vand.u32 4294901760, %v1586_v50  ;;  %v7212_v42 = vpack.c.bf16 %v1350_v28, %v1347_v57 }
  0x8d   : > { %1174 = vmatmul.mubr.f32.vlgmr.msra.gmra.mrb[4].mxu0 %v6750_v13  ;;  %5899 = vmatprep.subr.bf16.mxu1 %v7925_v6  ;;  %7945 = vst [vmem:[#allocation19_spill] sm:$0xff] %v7187_v59  ;;  %v7858_v6 = vand.u32 4294901760, %v7160_v2  ;;  %7947 = vst [vmem:[#allocation21_spill] sm:$0xff] %v7201_v16  ;;  %v1594_v54 = vand.u32 4294901760, %v1593_v61  ;;  %v7949_v8 = vand.u32 4294901760, %v7123_v12  ;;  %v1475_v50 = vand.u32 4294901760, %v1474_v51 }
  0x8e   : > { %5905 = vmatpush3.bf16.msra.mxu0 %v7033_v53  ;;  %1417 = vmatprep.mubr.f32.mxu0 %v6804_v24  ;;  %v5944_v24 = vpack.c.bf16 %v1468_v48, %v1461_v3  ;;  %v7245_v3 = vld [vmem:[%s7785_s2 + $0xf8] sm:$0xff]  ;;  %v7248_v48 = vsub.f32 %v1295_v44, %v1350_v28  ;;  %v7951_v28 = vand.u32 4294901760, %v7194_v35 }
  0x8f   : > { %5907 = vmatprep.subr.bf16.mxu0 %v7049_v45  ;;  %v7205_v45 = vsub.f32 %v1294_v14, %v1347_v57  ;;  %v1481_v9 = vsub.f32 %v7123_v12, %v7949_v8  ;;  %v1607_v62 = vsub.f32 %v7160_v2, %v7858_v6  ;;  %v7240_v57 = vld [vmem:[%s7785_s2 + $0xf0] sm:$0xff]  ;;  %v7253_v8 = vsub.f32 %v7181_v10, %v7861_v63 }
  0x90   : > { %5901 = vmatpush3.bf16.msra.mxu1 %v7927_v46  ;;  %v5946_v61 = vpack.c.bf16 %v1594_v54, %v1587_v36  ;;  %v1353_v46 = vand.u32 4294901760, %v7221_v15  ;;  %v7266_v63 = vsub.f32 %v7194_v35, %v7951_v28  ;;  %v1410_v51 = vand.u32 4294901760, %v7245_v3  ;;  %v7273_v36 = vld [vmem:[%s7785_s2 + $0x70] sm:$0xff]  ;;  %v7278_v54 = vld [vmem:[%s7785_s2 + $0x78] sm:$0xff] }
  0x91   : > { %5935 = vmatprep.subr.bf16.mxu1 %v7086_v41  ;;  %v7950_v41 = vand.u32 4294901760, %v7137_v40  ;;  %v1482_v44 = vand.u32 4294901760, %v1481_v9  ;;  %v1608_v9 = vand.u32 4294901760, %v1607_v62  ;;  %v7952_v28 = vand.u32 4294901760, %v7162_v5 }
  0x92   : > { %5909 = vmatpush3.bf16.msra.mxu0 %v7051_v17  ;;  %v7953_v6 = vand.u32 4294901760, %v7187_v59  ;;  %v7955_v17 = vand.u32 4294901760, %v7201_v16  ;;  %v7297_v62 = vsub.f32 %v7221_v15, %v1353_v46 }
  0x93   : > { %5911 = vmatprep.subr.bf16.mxu0 %v7064_v21  ;;  %v1600_v14 = vsub.f32 %v7137_v40, %v7950_v41  ;;  %1278 = vmatmul.mubr.f32.vlgmr.msra.gmra.mrb[4].mxu1 %v6750_v13  ;;  %v1356_v21 = vand.u32 4294901760, %v7226_v23  ;;  %v7958_v40 = vand.u32 4294901760, %v7248_v48 }
  0x94   : > { %5937 = vmatpush3.bf16.msra.mxu1 %v7109_v30  ;;  %1653 = vmatprep.mubr.f32.mxu1 %v7926_v56  ;;  %v1488_v30 = vsub.f32 %v7162_v5, %v7952_v28  ;;  %v1495_v41 = vsub.f32 %v7187_v59, %v7953_v6  ;;  %v7954_v56 = vand.u32 4294901760, %v7189_v31  ;;  %v1621_v2 = vsub.f32 %v7201_v16, %v7955_v17 }
  0x95   : > { %5939 = vmatprep.subr.bf16.mxu1 %v7135_v27  ;;  %v1601_v27 = vand.u32 4294901760, %v1600_v14  ;;  %v7300_v28 = vsub.f32 %v7226_v23, %v1356_v21  ;;  %v1359_v6 = vand.u32 4294901760, %v7273_v36  ;;  %v7956_v17 = vand.u32 4294901760, %v7240_v57 }
  0x96   : > { %5913 = vmatpush3.bf16.msra.mxu0 %v7068_v19  ;;  %v1614_v19 = vsub.f32 %v7189_v31, %v7954_v56  ;;  %v1362_v56 = vand.u32 4294901760, %v7278_v54  ;;  %v5948_v14 = vpack.c.bf16 %v1482_v44, %v1475_v50  ;;  %v1489_v31 = vand.u32 4294901760, %v1488_v30 }
  0x97   : > { %5915 = vmatprep.subr.bf16.mxu0 %v7099_v33  ;;  %v7308_v33 = vsub.f32 %v7240_v57, %v7956_v17  ;;  %v5950_v16 = vpack.c.bf16 %v1608_v9, %v1601_v27  ;;  %v1496_v59 = vand.u32 4294901760, %v1495_v41  ;;  %v7957_v5 = vand.u32 4294901760, %v7205_v45 }
  0x98   : > { %5941 = vmatpush3.bf16.msra.mxu1 %v7158_v37  ;;  %v7311_v37 = vsub.f32 %v7245_v3, %v1410_v51  ;;  %v1509_v3 = vsub.f32 %v7248_v48, %v7958_v40  ;;  %v7323_v15 = vsub.f32 %v7273_v36, %v1359_v6  ;;  %v7326_v23 = vsub.f32 %v7278_v54, %v1362_v56 }
  0x99   : > { %5943 = vmatprep.subr.bf16.mxu1 %v5942_v11  ;;  %v1622_v11 = vand.u32 4294901760, %v1621_v2  ;;  %v1502_v17 = vsub.f32 %v7205_v45, %v7957_v5  ;;  %v1515_v50 = vand.u32 4294901760, %v7297_v62  ;;  %v7959_v2 = vand.u32 4294901760, %v7253_v8 }
  0x9a   : > { %5917 = vmatpush3.bf16.msra.mxu0 %v7116_v0  ;;  %v1615_v0 = vand.u32 4294901760, %v1614_v19  ;;  %v7960_v40 = vand.u32 4294901760, %v7266_v63  ;;  %v7961_v30 = vand.u32 4294901760, %v7181_v10  ;;  %v7962_v36 = vand.u32 4294901760, %v7194_v35 }
  0x9b   : > { %5919 = vmatprep.subr.bf16.mxu0 %v7146_v49  ;;  %v1628_v5 = vsub.f32 %v7253_v8, %v7959_v2  ;;  %v5952_v27 = vpack.c.bf16 %v1496_v59, %v1489_v31  ;;  %v1503_v2 = vand.u32 4294901760, %v1502_v17  ;;  %v1510_v19 = vand.u32 4294901760, %v1509_v3 }
  0x9c   : > { %5945 = vmatpush3.bf16.msra.mxu1 %v5944_v24  ;;  %v1635_v24 = vsub.f32 %v7266_v63, %v7960_v40  ;;  %v7344_v54 = vpack.c.bf16 %v7962_v36, %v7961_v30  ;;  %v5954_v9 = vpack.c.bf16 %v1622_v11, %v1615_v0  ;;  %v1516_v40 = vsub.f32 %v7297_v62, %v1515_v50 }
  0x9d   : > { %5947 = vmatprep.subr.bf16.mxu1 %v5946_v61  ;;  %v7346_v61 = vpack.c.bf16 %v1356_v21, %v1353_v46  ;;  %v7963_v44 = vand.u32 4294901760, %v7300_v28  ;;  %v1529_v10 = vand.u32 4294901760, %v7323_v15  ;;  %v1536_v35 = vand.u32 4294901760, %v7326_v23 }
  0x9e   : > { %5921 = vmatpush3.bf16.msra.mxu0 %v7167_v4  ;;  %v1629_v31 = vand.u32 4294901760, %v1628_v5  ;;  %v1636_v21 = vand.u32 4294901760, %v1635_v24  ;;  %v7964_v0 = vand.u32 4294901760, %v7308_v33  ;;  %v7965_v46 = vand.u32 4294901760, %v7311_v37 }
  0x9f   : > { %5923 = vmatprep.subr.bf16.mxu0 %v7199_v7  ;;  %v1523_v41 = vsub.f32 %v7300_v28, %v7963_v44  ;;  %v7966_v11 = vand.u32 4294901760, %v7240_v57  ;;  %v5956_v3 = vpack.c.bf16 %v1510_v19, %v1503_v2  ;;  %v1517_v44 = vand.u32 4294901760, %v1516_v40 }
  0xa0   : > { %5949 = vmatpush3.bf16.msra.mxu1 %v5948_v14  ;;  %v1642_v59 = vsub.f32 %v7308_v33, %v7964_v0  ;;  %v1649_v14 = vsub.f32 %v7311_v37, %v7965_v46  ;;  %v1530_v5 = vsub.f32 %v7323_v15, %v1529_v10  ;;  %v1537_v24 = vsub.f32 %v7326_v23, %v1536_v35  ;;  %v7967_v0 = vld [vmem:[#allocation11_spill] sm:$0xff]  ;;  %v7968_v46 = vld [vmem:[#allocation13_spill] sm:$0xff] }
  0xa1   : > { %5951 = vmatprep.subr.bf16.mxu1 %v5950_v16  ;;  %v7366_v17 = vpack.c.bf16 %v1410_v51, %v7966_v11  ;;  %v1524_v16 = vand.u32 4294901760, %v1523_v41  ;;  %v7375_v30 = vpack.c.bf16 %v1362_v56, %v1359_v6  ;;  %v5958_v57 = vpack.c.bf16 %v1636_v21, %v1629_v31 }
  0xa2   : > { %5925 = vmatpush3.bf16.msra.mxu0 %v7212_v42  ;;  %v1643_v51 = vand.u32 4294901760, %v1642_v59  ;;  %v1650_v36 = vand.u32 4294901760, %v1649_v14  ;;  %v5966_v19 = vpack.c.bf16 %v6960_v29, %v6958_v1  ;;  %v1538_v2 = vand.u32 4294901760, %v1537_v24  ;;  %v7969_v14 = vld [vmem:[#allocation5_spill] sm:$0xff]  ;;  %v7973_v24 = vld [vmem:[#allocation7_spill] sm:$0xff] }
  0xa3   : > { %5927 = vmatprep.subr.bf16.mxu0 %v7344_v54  ;;  %v5960_v41 = vpack.c.bf16 %v1524_v16, %v1517_v44  ;;  %v5970_v56 = vpack.c.bf16 %v6990_v25, %v6988_v22  ;;  %v5972_v31 = vpack.c.bf16 %v7022_v39, %v7020_v43  ;;  %v5974_v21 = vpack.c.bf16 %v7066_v26, %v7053_v60  ;;  %v7971_v44 = vld [vmem:[#allocation17_spill] sm:$0xff] }
  0xa4   : > { %5953 = vmatpush3.bf16.msra.mxu1 %v5952_v27  ;;  %v1531_v27 = vand.u32 4294901760, %v1530_v5  ;;  %v5962_v6 = vpack.c.bf16 %v1650_v36, %v1643_v51  ;;  %v5978_v59 = vpack.c.bf16 %v7101_v55, %v7088_v58  ;;  %v5980_v11 = vpack.c.bf16 %v7123_v12, %v7121_v20  ;;  %v7972_v5 = vld [vmem:[#allocation6_spill] sm:$0xff]  ;;  %v7975_v51 = vld [vmem:[#allocation19_spill] sm:$0xff] }
  0xa5   : > { %5955 = vmatprep.subr.bf16.mxu1 %v5954_v9  ;;  %v5968_v9 = vpack.c.bf16 %v6972_v52, %v6970_v32 }
  0xa6   : > { %5929 = vmatpush3.bf16.msra.mxu0 %v7346_v61  ;;  %v5964_v40 = vpack.c.bf16 %v1538_v2, %v1531_v27  ;;  %v7978_v2 = vld [vmem:[#allocation8_spill] sm:$0xff] }
  0xa7   : > { %5931 = vmatprep.subr.bf16.mxu0 %v7366_v17 }
  0xa8   : > { %5957 = vmatpush3.bf16.msra.mxu1 %v5956_v3  ;;  %v7970_v3 = vld [vmem:[#allocation16_spill] sm:$0xff] }
  0xa9   : > { %5959 = vmatprep.subr.bf16.mxu1 %v5958_v57  ;;  %v5982_v16 = vpack.c.bf16 %v7971_v44, %v7970_v3  ;;  %v7974_v57 = vld [vmem:[#allocation18_spill] sm:$0xff] }
  0xaa   : > { %5933 = vmatpush3.bf16.msra.mxu0 %v7375_v30  ;;  %v5984_v36 = vpack.c.bf16 %v7975_v51, %v7974_v57 }
  0xab   : > { %5967 = vmatprep.subr.bf16.mxu0 %v5966_v19  ;;  %v7976_v19 = vld [vmem:[#allocation20_spill] sm:$0xff] }
  0xac   : > { %5961 = vmatpush3.bf16.msra.mxu1 %v5960_v41  ;;  %v7977_v41 = vld [vmem:[#allocation21_spill] sm:$0xff] }
  0xad   : > { %1423 = vmatmul.mubr.f32.vlgmr.msra.gmra.mrb[6].mxu0 %v6800_v47  ;;  %5963 = vmatprep.subr.bf16.mxu1 %v5962_v6  ;;  %v5976_v47 = vpack.c.bf16 %v7081_v34, %v7079_v38  ;;  %v5986_v27 = vpack.c.bf16 %v7977_v41, %v7976_v19  ;;  %v5988_v6 = vpack.c.bf16 %v7248_v48, %v7205_v45 }
  0xae   : > { %5969 = vmatpush3.bf16.msra.mxu0 %v5968_v9  ;;  %1790 = vmatprep.mubr.f32.mxu0 %v7967_v0  ;;  %v7979_v9 = vld [vmem:[#allocation14_spill] sm:$0xff]  ;;  %v5996_v0 = vpack.c.bf16 %v7326_v23, %v7323_v15 }
  0xaf   : > { %5971 = vmatprep.subr.bf16.mxu0 %v5970_v56  ;;  %v5990_v56 = vpack.c.bf16 %v7266_v63, %v7253_v8 }
  0xb0   : > { %5965 = vmatpush3.bf16.msra.mxu1 %v5964_v40  ;;  %v7980_v40 = vld [vmem:[#allocation15_spill] sm:$0xff] }
  0xb1   : > { %5999 = vmatprep.subr.bf16.mxu1 %v7017_v18 }
  0xb2   : > { %5973 = vmatpush3.bf16.msra.mxu0 %v5972_v31  ;;  %v5992_v31 = vpack.c.bf16 %v7300_v28, %v7297_v62 }
  0xb3   : > { %5975 = vmatprep.subr.bf16.mxu0 %v5974_v21  ;;  %1655 = vmatmul.mubr.f32.vlgmr.msra.gmra.mrb[6].mxu1 %v6750_v13  ;;  %v5994_v21 = vpack.c.bf16 %v7311_v37, %v7308_v33 }
  0xb4   : > { %6001 = vmatpush3.bf16.msra.mxu1 %v7033_v53  ;;  %1897 = vmatprep.mubr.f32.mxu1 %v7968_v46 }
  0xb5   : > { %6003 = vmatprep.subr.bf16.mxu1 %v7969_v14 }
  0xb6   : > { %5977 = vmatpush3.bf16.msra.mxu0 %v5976_v47  ;;  %v7981_v47 = vand.u32 4294901760, %v6958_v1  ;;  %v7987_v1 = vld [vmem:[#allocation10_spill] sm:$0xff] }
  0xb7   : > { %5979 = vmatprep.subr.bf16.mxu0 %v5978_v59  ;;  %v7982_v59 = vand.u32 4294901760, %v6960_v29  ;;  %v7988_v29 = vand.u32 4294901760, %v7020_v43  ;;  %v7994_v43 = vand.u32 4294901760, %v7081_v34 }
  0xb8   : > { %6005 = vmatpush3.bf16.msra.mxu1 %v7972_v5 }
  0xb9   : > { %6007 = vmatprep.subr.bf16.mxu1 %v7973_v24  ;;  %v6030_v46 = vpack.c.bf16 %v7982_v59, %v7981_v47 }
  0xba   : > { %5981 = vmatpush3.bf16.msra.mxu0 %v5980_v11  ;;  %v7983_v11 = vand.u32 4294901760, %v6970_v32  ;;  %v7989_v32 = vand.u32 4294901760, %v7022_v39  ;;  %v7995_v39 = vand.u32 4294901760, %v7088_v58  ;;  %v8000_v58 = vand.u32 4294901760, %v7970_v3 }
  0xbb   : > { %5983 = vmatprep.subr.bf16.mxu0 %v5982_v16  ;;  %v7984_v16 = vand.u32 4294901760, %v6972_v52  ;;  %v7990_v52 = vand.u32 4294901760, %v7053_v60  ;;  %v7996_v60 = vand.u32 4294901760, %v7101_v55  ;;  %v8001_v55 = vand.u32 4294901760, %v7971_v44 }
  0xbc   : > { %6009 = vmatpush3.bf16.msra.mxu1 %v7978_v2  ;;  %v8006_v3 = vand.u32 4294901760, %v7205_v45  ;;  %v8007_v44 = vand.u32 4294901760, %v7248_v48  ;;  %v8011_v45 = vand.u32 4294901760, %v7308_v33  ;;  %v8012_v48 = vand.u32 4294901760, %v7311_v37 }
  0xbd   : > { %6011 = vmatprep.subr.bf16.mxu1 %v7979_v9  ;;  %v6042_v59 = vpack.c.bf16 %v7996_v60, %v7995_v39  ;;  %v6324_v33 = vmov 0.0  }
  0xbe   : > { %5985 = vmatpush3.bf16.msra.mxu0 %v5984_v36  ;;  %v6032_v36 = vpack.c.bf16 %v7984_v16, %v7983_v11 }
  0xbf   : > { %5987 = vmatprep.subr.bf16.mxu0 %v5986_v27  ;;  %v7985_v27 = vand.u32 4294901760, %v6988_v22  ;;  %v7991_v22 = vand.u32 4294901760, %v7066_v26  ;;  %v7997_v26 = vld [vmem:[#allocation12_spill] sm:$0xff] }
  0xc0   : > { %6013 = vmatpush3.bf16.msra.mxu1 %v7980_v40 }
  0xc1   : > { %6015 = vmatprep.subr.bf16.mxu1 %v7146_v49 }
  0xc2   : > { %5989 = vmatpush3.bf16.msra.mxu0 %v5988_v6  ;;  %v7986_v6 = vand.u32 4294901760, %v6990_v25  ;;  %v7992_v25 = vld [vmem:[#allocation9_spill] sm:$0xff] }
  0xc3   : > { %5991 = vmatprep.subr.bf16.mxu0 %v5990_v56 }
  0xc4   : > { %6017 = vmatpush3.bf16.msra.mxu1 %v7167_v4  ;;  %v6034_v56 = vpack.c.bf16 %v7986_v6, %v7985_v27 }
  0xc5   : > { %6019 = vmatprep.subr.bf16.mxu1 %v7199_v7 }
  0xc6   : > { %5993 = vmatpush3.bf16.msra.mxu0 %v5992_v31  ;;  %v6036_v31 = vpack.c.bf16 %v7989_v32, %v7988_v29 }
  0xc7   : > { %5995 = vmatprep.subr.bf16.mxu0 %v5994_v21  ;;  %v6038_v21 = vpack.c.bf16 %v7991_v22, %v7990_v52  ;;  %v2180_v22 = vld [vmem:[%s7789_s6] sm:$0xff] }
  0xc8   : > { %6021 = vmatpush3.bf16.msra.mxu1 %v7212_v42 }
  0xc9   : > { %6023 = vmatprep.subr.bf16.mxu1 %v7344_v54 }
  0xca   : > { %5997 = vmatpush3.bf16.msra.mxu0 %v5996_v0  ;;  %v7993_v0 = vand.u32 4294901760, %v7079_v38  ;;  %v7999_v38 = vand.u32 4294901760, %v7123_v12  ;;  %v8004_v12 = vand.u32 4294901760, %v7976_v19  ;;  %v8010_v19 = vand.u32 4294901760, %v7300_v28 }
  0xcb   : > { %6031 = vmatprep.subr.bf16.mxu0 %v6030_v46  ;;  %v6046_v46 = vpack.c.bf16 %v8001_v55, %v8000_v58 }
  0xcc   : > { %6025 = vmatpush3.bf16.msra.mxu1 %v7346_v61  ;;  %v6040_v47 = vpack.c.bf16 %v7994_v43, %v7993_v0 }
  0xcd   : > { %1793 = vmatmul.mubr.f32.vlgmr.msra.gmra.mrb[8].mxu0 %v7987_v1  ;;  %6027 = vmatprep.subr.bf16.mxu1 %v7366_v17 }
  0xce   : > { %6033 = vmatpush3.bf16.msra.mxu0 %v6032_v36  ;;  %2067 = vmatprep.mubr.f32.mxu0 %v7992_v25 }
  0xcf   : > { %6035 = vmatprep.subr.bf16.mxu0 %v6034_v56 }
  0xd0   : > { %6029 = vmatpush3.bf16.msra.mxu1 %v7375_v30 }
  0xd1   : > { %6063 = vmatprep.subr.bf16.mxu1 %v7017_v18  ;;  %v7998_v18 = vand.u32 4294901760, %v7121_v20  ;;  %v8005_v20 = vand.u32 4294901760, %v7977_v41  ;;  %v6056_v41 = vpack.c.bf16 %v8010_v19, %v1515_v50 }
  0xd2   : > { %6037 = vmatpush3.bf16.msra.mxu0 %v6036_v31 }
  0xd3   : > { %6039 = vmatprep.subr.bf16.mxu0 %v6038_v21  ;;  %1901 = vmatmul.mubr.f32.vlgmr.msra.gmra.mrb[8].mxu1 %v7997_v26  ;;  %v6044_v34 = vpack.c.bf16 %v7999_v38, %v7998_v18  ;;  %v6050_v16 = vpack.c.bf16 %v8005_v20, %v8004_v12  ;;  %v3100_v18 = vld [vmem:[%s7791_s8] sm:$0xf] }
  0xd4   : > { %6065 = vmatpush3.bf16.msra.mxu1 %v7033_v53  ;;  %2171 = vmatprep.mubr.f32.mxu1 %v7992_v25  ;;  %v8002_v53 = vand.u32 4294901760, %v7974_v57  ;;  %v8009_v57 = vand.u32 4294901760, %v7266_v63  ;;  %v6326_v25 = vmov 0  }
  0xd5   : > { %6067 = vmatprep.subr.bf16.mxu1 %v7969_v14  ;;  %v8003_v14 = vand.u32 4294901760, %v7975_v51  ;;  %6248 = vset.pattern.permute.xlu0 %v6326_v25 }
  0xd6   : > { %6041 = vmatpush3.bf16.msra.mxu0 %v6040_v47  ;;  %6249 = vset.pattern.permute.xlu1 %v6326_v25 }
  0xd7   : > { %6043 = vmatprep.subr.bf16.mxu0 %v6042_v59  ;;  %v6048_v11 = vpack.c.bf16 %v8003_v14, %v8002_v53  ;;  %2183 = vperm.xlu0 %6248, %v2180_v22   ;;  %v3562_v22 = vld [vmem:[%s7792_s9] sm:$0xf] }
  0xd8   : > { %6069 = vmatpush3.bf16.msra.mxu1 %v7972_v5  ;;  %v6052_v5 = vpack.c.bf16 %v8007_v44, %v8006_v3 }
  0xd9   : > { %6071 = vmatprep.subr.bf16.mxu1 %v7973_v24  ;;  %v8008_v24 = vand.u32 4294901760, %v7253_v8 }
  0xda   : > { %6045 = vmatpush3.bf16.msra.mxu0 %v6044_v34 }
  0xdb   : > { %6047 = vmatprep.subr.bf16.mxu0 %v6046_v46  ;;  %v6054_v51 = vpack.c.bf16 %v8009_v57, %v8008_v24  ;;  %3103 = vperm.xlu0 %6248, %v3100_v18  }
  0xdc   : > { %6073 = vmatpush3.bf16.msra.mxu1 %v7978_v2  ;;  %v6058_v2 = vpack.c.bf16 %v8012_v48, %v8011_v45 }
  0xdd   : > { %6075 = vmatprep.subr.bf16.mxu1 %v7979_v9 }
  0xde   : > { %6049 = vmatpush3.bf16.msra.mxu0 %v6048_v11 }
  0xdf   : > { %6051 = vmatprep.subr.bf16.mxu0 %v6050_v16 }
  0xe0   : > { %6077 = vmatpush3.bf16.msra.mxu1 %v7980_v40 }
  0xe1   : > { %6079 = vmatprep.subr.bf16.mxu1 %v7146_v49  ;;  %v6060_v49 = vpack.c.bf16 %v1536_v35, %v1529_v10 }
  0xe2   : > { %6053 = vmatpush3.bf16.msra.mxu0 %v6052_v5 }
  0xe3   : > { %6055 = vmatprep.subr.bf16.mxu0 %v6054_v51 }
  0xe4   : > { %6081 = vmatpush3.bf16.msra.mxu1 %v7167_v4 }
  0xe5   : > { %6083 = vmatprep.subr.bf16.mxu1 %v7199_v7 }
  0xe6   : > { %6057 = vmatpush3.bf16.msra.mxu0 %v6056_v41 }
  0xe7   : > { %6059 = vmatprep.subr.bf16.mxu0 %v6058_v2 }
  0xe8   : > { %6085 = vmatpush3.bf16.msra.mxu1 %v7212_v42 }
  0xe9   : > { %6087 = vmatprep.subr.bf16.mxu1 %v7344_v54 }
  0xea   : > { %6061 = vmatpush3.bf16.msra.mxu0 %v6060_v49 }
  0xeb   : > { %5590 = vmatprep.subr.mxu0 %v6324_v33 }
  0xec   : > { %6089 = vmatpush3.bf16.msra.mxu1 %v7346_v61 }
  0xed   : > { %2069 = vmatmul.mubr.f32.vlgmr.msra.gmra.mrb[10].mxu0 %v6750_v13  ;;  %6091 = vmatprep.subr.bf16.mxu1 %v7366_v17 }
  0xee   : > { %5592 = vmatprep.mubr.msk.f32.mxu0 %vm6325_vm0, %v6324_v33 }
  0xf0   : > { %6093 = vmatpush3.bf16.msra.mxu1 %v7375_v30 }
  0xf1   : > { %5620 = vmatprep.subr.mxu1 %v6324_v33 }
  0xf3   : > { %2173 = vmatmul.mubr.f32.vlgmr.msra.gmra.mrb[10].mxu1 %v6750_v13  ;;  %v2179_v13 = vld [vmem:[%s7788_s5] sm:$0xff] }
  0xf4   : > { %5622 = vmatprep.mubr.msk.f32.mxu1 %vm6325_vm0, %v6324_v33  ;;  %v2188_v17 = vsel %vm2186_vm1, %v2179_v13, 0 }
  0xf5   : > { %v7526_v30 = vand.u32 4294901760, %v2188_v17 }
  0xf7   : > { %v7529_v27 = vsub.f32 %v2188_v17, %v7526_v30 }
  0xf9   : > { %v7532_v1 = vand.u32 4294901760, %v7529_v27 }
  0xfb   : > { %v2263_v52 = vsub.f32 %v7529_v27, %v7532_v1 }
  0xfd   : > { %v2264_v43 = vand.u32 4294901760, %v2263_v52  ;;  %v3563_v52 = vld [vmem:[%s7793_s10] sm:$0xf] }
  0xfe   : > { %3566 = vperm.xlu1 %6249, %v3563_v52  }
 0x120   : > { %v5154_v4 = vpop.f32.mrb[0].mxu0 }
 0x121   : > { %v5155_v7 = vpop.f32.mrb[1].mxu0 }
 0x122   : > { %v5156_v63 = vadd.f32 %v5155_v7, %v5154_v4 }
 0x126   : > { %v5189_v42 = vpop.f32.mrb[0].mxu1 }
 0x127   : > { %v5190_v8 = vpop.f32.mrb[1].mxu1 }
 0x128   : > { %v5191_v62 = vadd.f32 %v5190_v8, %v5189_v42 }
 0x12a   : > { %v762_v28 = vadd.f32 %v5191_v62, %v5156_v63 }
 0x140   : > { %v5224_v37 = vpop.f32.mrb[2].mxu0 }
 0x141   : > { %v5225_v15 = vpop.f32.mrb[3].mxu0 }
 0x142   : > { %v5226_v23 = vadd.f32 %v5225_v15, %v5224_v37  ;;  %v3099_v37 = vld [vmem:[%s7790_s7] sm:$0xf] }
 0x143   : > { %v3108_v15 = vsel %vm3106_vm3, %v3099_v37, 0 }
 0x144   : > { %v900_v50 = vadd.f32 %v5226_v23, %v762_v28  ;;  %v3176_v23 = vand.u32 4294901760, %v3108_v15 }
 0x146   : > { %v5259_v54 = vpop.f32.mrb[2].mxu1 }
 0x147   : > { %v5260_v61 = vpop.f32.mrb[3].mxu1 }
 0x148   : > { %v5261_v10 = vadd.f32 %v5260_v61, %v5259_v54  ;;  %v3177_v61 = vsub.f32 %v3108_v15, %v3176_v23 }
 0x14a   : > { %v1008_v35 = vadd.f32 %v5261_v10, %v900_v50  ;;  %v3178_v17 = vand.u32 4294901760, %v3177_v61 }
 0x156   : > { %v2184_v50 = vpop.permute.xlu0 %2183 }
 0x160   : > { %v5294_v9 = vpop.f32.mrb[4].mxu0 }
 0x161   : > { %v5295_v40 = vpop.f32.mrb[5].mxu0 }
 0x162   : > { %v5296_v36 = vadd.f32 %v5295_v40, %v5294_v9  ;;  %v3179_v40 = vsub.f32 %v3177_v61, %v3178_v17 }
 0x164   : > { %v1176_v6 = vadd.f32 %v5296_v36, %v1008_v35 }
 0x166   : > { %v5329_v56 = vpop.f32.mrb[4].mxu1 }
 0x167   : > { %v5330_v29 = vpop.f32.mrb[5].mxu1 }
 0x168   : > { %v5331_v32 = vadd.f32 %v5330_v29, %v5329_v56 }
 0x16a   : > { %v1280_v31 = vadd.f32 %v5331_v32, %v1176_v6  ;;  %v3180_v6 = vand.u32 4294901760, %v3179_v40  ;;  %v4526_v40 = vld [vmem:[%s7787_s4 + $0x18] sm:$0xff] }
 0x16c   : > { %v1283_v21 = vmul.f32 0.0625, %v1280_v31 }
 0x16e   : > { %v2192_v0 = vsel %vm2190_vm2, %v1283_v21, 0  ;;  %v3570_v21 = vsel %vm3106_vm3, %v3562_v22, 0 }
 0x16f   : > { %v2195_v47 = vand.u32 4294901760, %v2192_v0  ;;  %v3638_v25 = vand.u32 4294901760, %v3570_v21 }
 0x171   : > { %v2272_v39 = vsub.f32 %v2192_v0, %v2195_v47  ;;  %5591 = vmatpush3.msra.mxu0 %v2195_v47 }
 0x172   : > { %5593 = vmatmul.mubr.f32.vlgmr.msra.gmra.mrb[12].mxu0 %v2264_v43  ;;  %5595 = vmatprep.subr.mxu0 %v6324_v33 }
 0x173   : > { %v2273_v60 = vand.u32 4294901760, %v2272_v39  ;;  %5597 = vmatprep.mubr.msk.f32.mxu0 %vm6325_vm0, %v6324_v33 }
 0x175   : > { %v2274_v59 = vsub.f32 %v2272_v39, %v2273_v60 }
 0x177   : > { %v2275_v26 = vand.u32 4294901760, %v2274_v59 }
 0x179   : > { %5596 = vmatpush3.msra.mxu0 %v2275_v26 }
 0x17a   : > { %5598 = vmatmul.mubr.f32.vlgmr.msra.gmra.mrb[12].mxu0 %v7526_v30  ;;  %5600 = vmatprep.subr.mxu0 %v6324_v33 }
 0x17b   : > { %5601 = vmatpush3.msra.mxu0 %v2272_v39  ;;  %5602 = vmatprep.mubr.msk.f32.mxu0 %vm6325_vm0, %v6324_v33 }
 0x17c   : > { %5605 = vmatprep.subr.mxu0 %v6324_v33 }
 0x180   : > { %v5364_v38 = vpop.f32.mrb[6].mxu0 }
 0x181   : > { %v5365_v34 = vpop.f32.mrb[7].mxu0 }
 0x182   : > { %v5366_v58 = vadd.f32 %v5365_v34, %v5364_v38  ;;  %5603 = vmatmul.mubr.f32.vlgmr.msra.gmra.mrb[12].mxu0 %v7529_v27 }
 0x183   : > { %5606 = vmatpush3.msra.mxu0 %v2195_v47  ;;  %5607 = vmatprep.mubr.msk.f32.mxu0 %vm6325_vm0, %v6324_v33 }
 0x184   : > { %5610 = vmatprep.subr.mxu0 %v6324_v33 }
 0x186   : > { %v5399_v55 = vpop.f32.mrb[6].mxu1 }
 0x187   : > { %v5400_v46 = vpop.f32.mrb[7].mxu1 }
 0x188   : > { %v5401_v53 = vadd.f32 %v5400_v46, %v5399_v55 }
 0x18a   : > { %v1657_v14 = vadd.f32 %v5401_v53, %v5366_v58  ;;  %5608 = vmatmul.mubr.f32.vlgmr.msra.gmra.mrb[12].mxu0 %v7532_v1 }
 0x18b   : > { %5611 = vmatpush3.msra.mxu0 %v2273_v60  ;;  %5612 = vmatprep.mubr.msk.f32.mxu0 %vm6325_vm0, %v6324_v33 }
 0x18c   : > { %5615 = vmatprep.subr.mxu0 %v6324_v33 }
 0x192   : > { %5613 = vmatmul.mubr.f32.vlgmr.msra.gmra.mrb[12].mxu0 %v7526_v30 }
 0x193   : > { %5616 = vmatpush3.msra.mxu0 %v2195_v47  ;;  %5617 = vmatprep.mubr.msk.f32.mxu0 %vm6325_vm0, %v6324_v33 }
 0x194   : > { %5650 = vmatprep.subr.mxu0 %v6324_v33 }
 0x19a   : > { %5618 = vmatmul.mubr.f32.vlgmr.msra.gmra.mrb[12].mxu0 %v7526_v30 }
 0x19b   : > { %5652 = vmatprep.mubr.msk.f32.mxu0 %vm6325_vm0, %v6324_v33 }
 0x1a0   : > { %v5434_v11 = vpop.f32.mrb[8].mxu0 }
 0x1a1   : > { %v5435_v12 = vpop.f32.mrb[9].mxu0 }
 0x1a2   : > { %v5436_v20 = vadd.f32 %v5435_v12, %v5434_v11 }
 0x1a4   : > { %v1795_v16 = vadd.f32 %v5436_v20, %v1657_v14  ;;  %v4025_v20 = vld [vmem:[%s7786_s3 + $0x8] sm:$0xff] }
 0x1a6   : > { %v5469_v3 = vpop.f32.mrb[8].mxu1 }
 0x1a7   : > { %v5470_v44 = vpop.f32.mrb[9].mxu1 }
 0x1a8   : > { %v5471_v5 = vadd.f32 %v5470_v44, %v5469_v3  ;;  %v4024_v3 = vld [vmem:[%s7786_s3] sm:$0xff]  ;;  %v4032_v44 = vand.u32 4294901760, %v4025_v20 }
 0x1aa   : > { %v1903_v24 = vadd.f32 %v5471_v5, %v1795_v16  ;;  %v4027_v16 = vld [vmem:[%s7786_s3 + $0x18] sm:$0xff] }
 0x1ab   : > { %v4036_v5 = vand.u32 4294901760, %v4027_v16 }
 0x1c0   : > { %v5504_v57 = vpop.f32.mrb[10].mxu0 }
 0x1c1   : > { %v5505_v51 = vpop.f32.mrb[11].mxu0 }
 0x1c2   : > { %v5506_v19 = vadd.f32 %v5505_v51, %v5504_v57  ;;  %v4034_v57 = vand.u32 4294901760, %v4024_v3 }
 0x1c4   : > { %v2071_v41 = vadd.f32 %v5506_v19, %v1903_v24  ;;  %v4026_v24 = vld [vmem:[%s7786_s3 + $0x10] sm:$0xff]  ;;  %v7645_v19 = vpack.c.bf16 %v4036_v5, %v4032_v44 }
 0x1c5   : > { %v4038_v51 = vand.u32 4294901760, %v4026_v24 }
 0x1c6   : > { %v5539_v45 = vpop.f32.mrb[10].mxu1 }
 0x1c7   : > { %v5540_v48 = vpop.f32.mrb[11].mxu1 }
 0x1c8   : > { %v5541_v2 = vadd.f32 %v5540_v48, %v5539_v45  ;;  %v7649_v45 = vpack.c.bf16 %v4038_v51, %v4034_v57  ;;  %v7651_v48 = vsub.f32 %v4026_v24, %v4038_v51 }
 0x1ca   : > { %v2175_v49 = vadd.f32 %v5541_v2, %v2071_v41  ;;  %v7647_v41 = vsub.f32 %v4024_v3, %v4034_v57  ;;  %v7655_v2 = vsub.f32 %v4025_v20, %v4032_v44 }
 0x1cc   : > { %v2178_v4 = vmul.f32 0.0625, %v2175_v49  ;;  %v7657_v49 = vsub.f32 %v4027_v16, %v4036_v5 }
 0x1ce   : > { %v2646_v7 = vsel %vm2190_vm2, %v2178_v4, 0  ;;  %v4114_v4 = vand.u32 4294901760, %v7655_v2 }
 0x1cf   : > { %v2649_v63 = vand.u32 4294901760, %v2646_v7 }
 0x1d1   : > { %v2726_v42 = vsub.f32 %v2646_v7, %v2649_v63  ;;  %5621 = vmatpush3.msra.mxu1 %v2649_v63  ;;  %v4126_v7 = vand.u32 4294901760, %v7657_v49 }
 0x1d2   : > { %5623 = vmatmul.mubr.f32.vlgmr.msra.gmra.mrb[12].mxu1 %v2264_v43  ;;  %5625 = vmatprep.subr.mxu1 %v6324_v33  ;;  %v3639_v43 = vsub.f32 %v3570_v21, %v3638_v25  ;;  %v3104_v21 = vpop.permute.xlu0 %3103 }
 0x1d3   : > { %v2727_v8 = vand.u32 4294901760, %v2726_v42  ;;  %5627 = vmatprep.mubr.msk.f32.mxu1 %vm6325_vm0, %v6324_v33 }
 0x1d4   : > { %v3640_v59 = vand.u32 4294901760, %v3639_v43 }
 0x1d5   : > { %v2728_v62 = vsub.f32 %v2726_v42, %v2727_v8 }
 0x1d6   : > { %v3641_v38 = vsub.f32 %v3639_v43, %v3640_v59 }
 0x1d7   : > { %v2729_v28 = vand.u32 4294901760, %v2728_v62  ;;  %v4127_v62 = vsub.f32 %v7657_v49, %v4126_v7 }
 0x1d8   : > { %v3642_v55 = vand.u32 4294901760, %v3641_v38 }
 0x1d9   : > { %5626 = vmatpush3.msra.mxu1 %v2729_v28 }
 0x1da   : > { %5628 = vmatmul.mubr.f32.vlgmr.msra.gmra.mrb[12].mxu1 %v7526_v30  ;;  %5630 = vmatprep.subr.mxu1 %v6324_v33 }
 0x1db   : > { %5631 = vmatpush3.msra.mxu1 %v2726_v42  ;;  %5632 = vmatprep.mubr.msk.f32.mxu1 %vm6325_vm0, %v6324_v33  ;;  %v4132_v42 = vand.u32 4294901760, %v7651_v48 }
 0x1dc   : > { %5635 = vmatprep.subr.mxu1 %v6324_v33 }
 0x1dd   : > { %v4133_v37 = vsub.f32 %v7651_v48, %v4132_v42 }
 0x1e2   : > { %5633 = vmatmul.mubr.f32.vlgmr.msra.gmra.mrb[12].mxu1 %v7529_v27 }
 0x1e3   : > { %5636 = vmatpush3.msra.mxu1 %v2649_v63  ;;  %5637 = vmatprep.mubr.msk.f32.mxu1 %vm6325_vm0, %v6324_v33 }
 0x1e4   : > { %5640 = vmatprep.subr.mxu1 %v6324_v33 }
 0x1ea   : > { %5638 = vmatmul.mubr.f32.vlgmr.msra.gmra.mrb[12].mxu1 %v7532_v1 }
 0x1eb   : > { %5641 = vmatpush3.msra.mxu1 %v2727_v8  ;;  %5642 = vmatprep.mubr.msk.f32.mxu1 %vm6325_vm0, %v6324_v33  ;;  %v4115_v8 = vsub.f32 %v7655_v2, %v4114_v4 }
 0x1ec   : > { %5645 = vmatprep.subr.mxu1 %v6324_v33 }
 0x1ed   : > { %v4116_v15 = vand.u32 4294901760, %v4115_v8 }
 0x1f2   : > { %5643 = vmatmul.mubr.f32.vlgmr.msra.gmra.mrb[12].mxu1 %v7526_v30 }
 0x1f3   : > { %5646 = vmatpush3.msra.mxu1 %v2649_v63  ;;  %5647 = vmatprep.mubr.msk.f32.mxu1 %vm6325_vm0, %v6324_v33  ;;  %v4120_v63 = vand.u32 4294901760, %v7647_v41 }
 0x1f4   : > { %5680 = vmatprep.subr.mxu1 %v6324_v33 }
 0x1f5   : > { %v4121_v28 = vsub.f32 %v7647_v41, %v4120_v63 }
 0x1fa   : > { %5648 = vmatmul.mubr.f32.vlgmr.msra.gmra.mrb[12].mxu1 %v7526_v30 }
 0x1fb   : > { %5682 = vmatprep.mubr.msk.f32.mxu1 %vm6325_vm0, %v6324_v33 }
 0x26d   : > { %v2636_v54 = vpop.f32.mrb[12].mxu0 }
 0x26e   : > { %v6142_v10 = vadd.f32 %v2636_v54, %v2184_v50  ;;  %v5619_v35 = vpop.f32.mrb[13].mxu0  ;;  %v4134_v54 = vand.u32 4294901760, %v4133_v37 }
 0x26f   : > { %v6102_v35 = vpack.c.bf16 %v7657_v49, %v7655_v2 }
 0x270   : > { %v2640_v13 = vadd.f32 3.0, %v6142_v10 }
 0x272   : > { %v2641_v9 = vmax.f32 %v2640_v13, 0.0  ;;  %v6104_v13 = vpack.c.bf16 %v7651_v48, %v7647_v41 }
 0x274   : > { %v2642_v30 = vmin.f32 %v2641_v9, 6.0  ;;  %v7673_v9 = vpack.c.bf16 %v4132_v42, %v4120_v63  ;;  %v3567_v42 = vpop.permute.xlu1 %3566 }
 0x276   : > { %v2643_v36 = vmul.f32 0.16666667, %v2642_v30  ;;  %v4524_v30 = vld [vmem:[%s7787_s4 + $0x8] sm:$0xff] }
 0x278   : > { %v2644_v27 = vmul.f32 %v6142_v10, %v2643_v36  ;;  %v4523_v36 = vld [vmem:[%s7787_s4] sm:$0xff] }
 0x27a   : > { %v3111_v56 = vand.u32 4294901760, %v2644_v27 }
 0x27c   : > { %v3188_v1 = vsub.f32 %v2644_v27, %v3111_v56  ;;  %5651 = vmatpush3.msra.mxu0 %v3111_v56  ;;  %v4530_v27 = vand.u32 4294901760, %v4524_v30 }
 0x27d   : > { %5653 = vmatmul.mubr.f32.vlgmr.msra.gmra.mrb[14].mxu0 %v3180_v6  ;;  %5655 = vmatprep.subr.mxu0 %v6324_v33  ;;  %v4534_v6 = vand.u32 4294901760, %v4526_v40 }
 0x27e   : > { %v3189_v29 = vand.u32 4294901760, %v3188_v1  ;;  %5657 = vmatprep.mubr.msk.f32.mxu0 %vm6325_vm0, %v6324_v33 }
 0x280   : > { %v3190_v32 = vsub.f32 %v3188_v1, %v3189_v29 }
 0x282   : > { %v3191_v31 = vand.u32 4294901760, %v3190_v32  ;;  %v7687_v32 = vpack.c.bf16 %v4534_v6, %v4530_v27 }
 0x284   : > { %5656 = vmatpush3.msra.mxu0 %v3191_v31 }
 0x285   : > { %5658 = vmatmul.mubr.f32.vlgmr.msra.gmra.mrb[14].mxu0 %v3176_v23  ;;  %5660 = vmatprep.subr.mxu0 %v6324_v33 }
 0x286   : > { %5661 = vmatpush3.msra.mxu0 %v3188_v1  ;;  %5662 = vmatprep.mubr.msk.f32.mxu0 %vm6325_vm0, %v6324_v33  ;;  %v4532_v1 = vand.u32 4294901760, %v4523_v36 }
 0x287   : > { %5665 = vmatprep.subr.mxu0 %v6324_v33 }
 0x288   : > { %v7689_v31 = vsub.f32 %v4523_v36, %v4532_v1  ;;  %v6259_v36 = vld [vmem:[%s6717_s24] sm:$0xff]  ;;  %s6264_s24 = sshll.u32 %s6327_s21, 4  ;;  %s6265_s24 = int_to_ptr.vmem [resolvable:$false] %s6264_s24 }
 0x289   : > { %s6266_s12 = scalar_lea.vmem %s6265_s24, 256  ;;  %p6267_p0 = scmp.lt.s32.totalorder %s7743_s15, %s6265_s24 }
 0x28a   : > { %p6268_p1 = scmp.lt.s32.totalorder %s6266_s12, %s6260_s0 }
 0x28c   : > { %p6269_p2 = por %p6268_p1, %p6267_p0 }
 0x28d   : > { %5663 = vmatmul.mubr.f32.vlgmr.msra.gmra.mrb[14].mxu0 %v3177_v61 }
 0x28e   : > { %5666 = vmatpush3.msra.mxu0 %v3111_v56  ;;  %5667 = vmatprep.mubr.msk.f32.mxu0 %vm6325_vm0, %v6324_v33  ;;  %p6270_p3 = pnand %p6269_p2, %p6263_p13 }
 0x28f   : > { %5670 = vmatprep.subr.mxu0 %v6324_v33 }
 0x295   : > { %5668 = vmatmul.mubr.f32.vlgmr.msra.gmra.mrb[14].mxu0 %v3178_v17  ;;  %v7671_v17 = vpack.c.bf16 %v4126_v7, %v4114_v4 }
 0x296   : > { %5671 = vmatpush3.msra.mxu0 %v3189_v29  ;;  %5672 = vmatprep.mubr.msk.f32.mxu0 %vm6325_vm0, %v6324_v33 }
 0x297   : > { %5675 = vmatprep.subr.mxu0 %v6324_v33 }
 0x29d   : > { %5673 = vmatmul.mubr.f32.vlgmr.msra.gmra.mrb[14].mxu0 %v3176_v23 }
 0x29e   : > { %5676 = vmatpush3.msra.mxu0 %v3111_v56  ;;  %5677 = vmatprep.mubr.msk.f32.mxu0 %vm6325_vm0, %v6324_v33  ;;  %v4525_v56 = vld [vmem:[%s7787_s4 + $0x10] sm:$0xff] }
 0x29f   : > { %6095 = vmatprep.subr.bf16.mxu0 %v7645_v19  ;;  %v4536_v29 = vand.u32 4294901760, %v4525_v56 }
 0x2a1   : > { %v7691_v52 = vpack.c.bf16 %v4536_v29, %v4532_v1  ;;  %v7693_v22 = vsub.f32 %v4525_v56, %v4536_v29 }
 0x2a3   : > { %v4630_v38 = vand.u32 4294901760, %v7693_v22  ;;  %v6128_v24 = vpack.c.bf16 %v7693_v22, %v7689_v31 }
 0x2a5   : > { %5678 = vmatmul.mubr.f32.vlgmr.msra.gmra.mrb[14].mxu0 %v3176_v23  ;;  %v4128_v23 = vand.u32 4294901760, %v4127_v62 }
 0x2a6   : > { %4100 = vmatprep.mubr.f32.mxu0 %v6324_v33  ;;  %6097 = vmatpush1.bf16.msra.mxu0 %v7649_v45 }
 0x2a7   : > { %v6098_v61 = vpack.c.bf16 %v4128_v23, %v4116_v15 }
 0x2a9   : > { %6099 = vmatprep.subr.bf16.mxu0 %v6098_v61 }
 0x2cd   : > { %v3090_v0 = vpop.f32.mrb[12].mxu1 }
 0x2ce   : > { %v6143_v47 = vadd.f32 %v3090_v0, %v2184_v50  ;;  %v5649_v39 = vpop.f32.mrb[13].mxu1  ;;  %v4122_v50 = vand.u32 4294901760, %v4121_v28 }
 0x2cf   : > { %v7699_v39 = vsub.f32 %v4526_v40, %v4534_v6 }
 0x2d0   : > { %v3094_v60 = vadd.f32 3.0, %v6143_v47  ;;  %v6100_v10 = vpack.c.bf16 %v4134_v54, %v4122_v50 }
 0x2d2   : > { %v3095_v26 = vmax.f32 %v3094_v60, 0.0 }
 0x2d4   : > { %v3096_v18 = vmin.f32 %v3095_v26, 6.0  ;;  %v4624_v26 = vand.u32 4294901760, %v7699_v39 }
 0x2d6   : > { %v3097_v34 = vmul.f32 0.16666667, %v3096_v18  ;;  %v4618_v18 = vand.u32 4294901760, %v7689_v31 }
 0x2d8   : > { %v3098_v58 = vmul.f32 %v6143_v47, %v3097_v34  ;;  %v7697_v47 = vsub.f32 %v4524_v30, %v4530_v27  ;;  %v6136_v49 = vpack.c.bf16 %v4630_v38, %v4618_v18 }
 0x2da   : > { %v3573_v46 = vand.u32 4294901760, %v3098_v58  ;;  %v6126_v5 = vpack.c.bf16 %v7699_v39, %v7697_v47 }
 0x2dc   : > { %v3650_v53 = vsub.f32 %v3098_v58, %v3573_v46  ;;  %5681 = vmatpush3.msra.mxu1 %v3573_v46  ;;  %v4625_v58 = vsub.f32 %v7699_v39, %v4624_v26 }
 0x2dd   : > { %5683 = vmatmul.mubr.f32.vlgmr.msra.gmra.mrb[14].mxu1 %v3642_v55  ;;  %5685 = vmatprep.subr.mxu1 %v6324_v33  ;;  %v4619_v55 = vsub.f32 %v7689_v31, %v4618_v18 }
 0x2de   : > { %v3651_v14 = vand.u32 4294901760, %v3650_v53  ;;  %5687 = vmatprep.mubr.msk.f32.mxu1 %vm6325_vm0, %v6324_v33 }
 0x2e0   : > { %v3652_v11 = vsub.f32 %v3650_v53, %v3651_v14 }
 0x2e2   : > { %v3653_v12 = vand.u32 4294901760, %v3652_v11  ;;  %v4620_v11 = vand.u32 4294901760, %v4619_v55 }
 0x2e4   : > { %5686 = vmatpush3.msra.mxu1 %v3653_v12 }
 0x2e5   : > { %5688 = vmatmul.mubr.f32.vlgmr.msra.gmra.mrb[14].mxu1 %v3638_v25  ;;  %5690 = vmatprep.subr.mxu1 %v6324_v33 }
 0x2e6   : > { %5691 = vmatpush3.msra.mxu1 %v3650_v53  ;;  %5692 = vmatprep.mubr.msk.f32.mxu1 %vm6325_vm0, %v6324_v33 }
 0x2e7   : > { %5695 = vmatprep.subr.mxu1 %v6324_v33 }
 0x2ed   : > { %5693 = vmatmul.mubr.f32.vlgmr.msra.gmra.mrb[14].mxu1 %v3639_v43 }
 0x2ee   : > { %5696 = vmatpush3.msra.mxu1 %v3573_v46  ;;  %5697 = vmatprep.mubr.msk.f32.mxu1 %vm6325_vm0, %v6324_v33 }
 0x2ef   : > { %5700 = vmatprep.subr.mxu1 %v6324_v33 }
 0x2f5   : > { %5698 = vmatmul.mubr.f32.vlgmr.msra.gmra.mrb[14].mxu1 %v3640_v59  ;;  %v4612_v59 = vand.u32 4294901760, %v7697_v47 }
 0x2f6   : > { %5701 = vmatpush3.msra.mxu1 %v3651_v14  ;;  %5702 = vmatprep.mubr.msk.f32.mxu1 %vm6325_vm0, %v6324_v33  ;;  %v4626_v14 = vand.u32 4294901760, %v4625_v58 }
 0x2f7   : > { %5705 = vmatprep.subr.mxu1 %v6324_v33  ;;  %v4613_v34 = vsub.f32 %v7697_v47, %v4612_v59  ;;  %v6134_v2 = vpack.c.bf16 %v4624_v26, %v4612_v59 }
 0x2f9   : > { %v4614_v53 = vand.u32 4294901760, %v4613_v34 }
 0x2fb   : > { %v6122_v20 = vpack.c.bf16 %v4626_v14, %v4614_v53 }
 0x2fd   : > { %5703 = vmatmul.mubr.f32.vlgmr.msra.gmra.mrb[14].mxu1 %v3638_v25 }
 0x2fe   : > { %5706 = vmatpush3.msra.mxu1 %v3573_v46  ;;  %5707 = vmatprep.mubr.msk.f32.mxu1 %vm6325_vm0, %v6324_v33  ;;  %v4631_v46 = vsub.f32 %v7693_v22, %v4630_v38 }
 0x2ff   : > { %6119 = vmatprep.subr.bf16.mxu1 %v7687_v32 }
 0x300   : > { %v4632_v12 = vand.u32 4294901760, %v4631_v46 }
 0x302   : > { %v6124_v16 = vpack.c.bf16 %v4632_v12, %v4620_v11 }
 0x305   : > { %5708 = vmatmul.mubr.f32.vlgmr.msra.gmra.mrb[14].mxu1 %v3638_v25 }
 0x306   : > { %4598 = vmatprep.mubr.f32.mxu1 %v6324_v33  ;;  %6121 = vmatpush1.bf16.msra.mxu1 %v7691_v52 }
 0x307   : > { %6123 = vmatprep.subr.bf16.mxu1 %v6122_v20 }
 0x378   : > { %v3552_v25 = vpop.f32.mrb[14].mxu0 }
 0x379   : > { %v6144_v0 = vadd.f32 %v3552_v25, %v3104_v21  ;;  %v5679_v43 = vpop.f32.mrb[15].mxu0 }
 0x37b   : > { %v5113_v60 = vmul.f32 -1.442695, %v6144_v0 }
 0x37d   : > { %6251 = vpow2.f32 %v5113_v60 }
 0x387   : > { %v6252_v3 = vpop.eup %6251 }
 0x388   : > { %v3559_v44 = vadd.f32 1.0, %v6252_v3 }
 0x38a   : > { %6253 = vrcp.f32 %v3559_v44 }
 0x394   : > { %v6254_v57 = vpop.eup %6253 }
 0x395   : > { %v4030_v51 = vsel %vm4028_vm4, %v6254_v57, 0 }
 0x396   : > { %v4101_v41 = vand.u32 4294901760, %v4030_v51 }
 0x398   : > { %v4102_v48 = vsub.f32 %v4030_v51, %v4101_v41 }
 0x39a   : > { %v4103_v4 = vand.u32 4294901760, %v4102_v48 }
 0x39c   : > { %v4104_v7 = vsub.f32 %v4102_v48, %v4103_v4 }
 0x39e   : > { %v4105_v63 = vand.u32 4294901760, %v4104_v7 }
 0x3a0   : > { %4106 = vmatmul.mubr.f32.vlgmr.msra.gmra.mrb[16].mxu0 %v4105_v63 }
 0x3a1   : > { %6101 = vmatpush1.bf16.msra.mxu0 %v6100_v10  ;;  %4196 = vmatprep.mubr.f32.mxu0 %v6324_v33 }
 0x3a2   : > { %6103 = vmatprep.subr.bf16.mxu0 %v6102_v35 }
 0x3a8   : > { %4198 = vmatmul.mubr.f32.vlgmr.msra.gmra.mrb[16].mxu0 %v4101_v41 }
 0x3a9   : > { %6105 = vmatpush1.bf16.msra.mxu0 %v6104_v13  ;;  %4276 = vmatprep.mubr.f32.mxu0 %v6324_v33 }
 0x3aa   : > { %6107 = vmatprep.subr.bf16.mxu0 %v7645_v19 }
 0x3b0   : > { %4279 = vmatmul.mubr.f32.vlgmr.msra.gmra.mrb[16].mxu0 %v4102_v48 }
 0x3b1   : > { %6109 = vmatpush1.bf16.msra.mxu0 %v7649_v45  ;;  %4353 = vmatprep.mubr.f32.mxu0 %v6324_v33 }
 0x3b2   : > { %6111 = vmatprep.subr.bf16.mxu0 %v7671_v17 }
 0x3b8   : > { %4357 = vmatmul.mubr.f32.vlgmr.msra.gmra.mrb[16].mxu0 %v4103_v4 }
 0x3b9   : > { %6113 = vmatpush1.bf16.msra.mxu0 %v7673_v9  ;;  %4439 = vmatprep.mubr.f32.mxu0 %v6324_v33 }
 0x3ba   : > { %6115 = vmatprep.subr.bf16.mxu0 %v7645_v19 }
 0x3c0   : > { %4441 = vmatmul.mubr.f32.vlgmr.msra.gmra.mrb[16].mxu0 %v4101_v41 }
 0x3c1   : > { %6117 = vmatpush1.bf16.msra.mxu0 %v7649_v45  ;;  %4515 = vmatprep.mubr.f32.mxu0 %v6324_v33 }
 0x3c8   : > { %4517 = vmatmul.mubr.f32.vlgmr.msra.gmra.mrb[16].mxu0 %v4101_v41 }
 0x3d8   : > { %v4014_v8 = vpop.f32.mrb[14].mxu1 }
 0x3d9   : > { %v6145_v62 = vadd.f32 %v4014_v8, %v3567_v42  ;;  %v5709_v28 = vpop.f32.mrb[15].mxu1 }
 0x3db   : > { %v5114_v37 = vmul.f32 -1.442695, %v6145_v62 }
 0x3dd   : > { %6255 = vpow2.f32 %v5114_v37 }
 0x3e7   : > { %v6256_v15 = vpop.eup %6255 }
 0x3e8   : > { %v4021_v23 = vadd.f32 1.0, %v6256_v15 }
 0x3ea   : > { %6257 = vrcp.f32 %v4021_v23 }
 0x3f4   : > { %v6258_v50 = vpop.eup %6257 }
 0x3f5   : > { %v4528_v54 = vsel %vm4028_vm4, %v6258_v50, 0 }
 0x3f6   : > { %v4599_v61 = vand.u32 4294901760, %v4528_v54 }
 0x3f8   : > { %v4600_v19 = vsub.f32 %v4528_v54, %v4599_v61 }
 0x3fa   : > { %v4601_v10 = vand.u32 4294901760, %v4600_v19 }
 0x3fc   : > { %v4602_v35 = vsub.f32 %v4600_v19, %v4601_v10 }
 0x3fe   : > { %v4603_v45 = vand.u32 4294901760, %v4602_v35 }
 0x400   : > { %4604 = vmatmul.mubr.f32.vlgmr.msra.gmra.mrb[16].mxu1 %v4603_v45 }
 0x401   : > { %6125 = vmatpush1.bf16.msra.mxu1 %v6124_v16  ;;  %4694 = vmatprep.mubr.f32.mxu1 %v6324_v33 }
 0x402   : > { %6127 = vmatprep.subr.bf16.mxu1 %v6126_v5 }
 0x408   : > { %4696 = vmatmul.mubr.f32.vlgmr.msra.gmra.mrb[16].mxu1 %v4599_v61 }
 0x409   : > { %6129 = vmatpush1.bf16.msra.mxu1 %v6128_v24  ;;  %4774 = vmatprep.mubr.f32.mxu1 %v6324_v33 }
 0x40a   : > { %6131 = vmatprep.subr.bf16.mxu1 %v7687_v32 }
 0x410   : > { %4777 = vmatmul.mubr.f32.vlgmr.msra.gmra.mrb[16].mxu1 %v4600_v19 }
 0x411   : > { %6133 = vmatpush1.bf16.msra.mxu1 %v7691_v52  ;;  %4851 = vmatprep.mubr.f32.mxu1 %v6324_v33 }
 0x412   : > { %6135 = vmatprep.subr.bf16.mxu1 %v6134_v2 }
 0x418   : > { %4855 = vmatmul.mubr.f32.vlgmr.msra.gmra.mrb[16].mxu1 %v4601_v10 }
 0x419   : > { %6137 = vmatpush1.bf16.msra.mxu1 %v6136_v49  ;;  %4937 = vmatprep.mubr.f32.mxu1 %v6324_v33 }
 0x41a   : > { %6139 = vmatprep.subr.bf16.mxu1 %v7687_v32 }
 0x420   : > { %4939 = vmatmul.mubr.f32.vlgmr.msra.gmra.mrb[16].mxu1 %v4599_v61 }
 0x421   : > { %6141 = vmatpush1.bf16.msra.mxu1 %v7691_v52  ;;  %5013 = vmatprep.mubr.f32.mxu1 %v6324_v33 }
 0x428   : > { %5015 = vmatmul.mubr.f32.vlgmr.msra.gmra.mrb[16].mxu1 %v4599_v61 }
 0x49b   : > { %v4518_v13 = vpop.f32.mrb[16].mxu0 }
 0x49c   : > { %v4520_v17 = vpop.f32.mrb[17].mxu0 }
 0x49d   : > { %v5023_v9 = vcombine.low %v4518_v13, %v4520_v17 }
 0x49f   : > { %v5025_v27 = vmul.f32 %v6259_v36, %v5023_v9 }
 0x4fb   : > { %v5016_v30 = vpop.f32.mrb[16].mxu1 }
 0x4fc   : > { %v5018_v40 = vpop.f32.mrb[17].mxu1 }
 0x4fd   : > { %v5028_v6 = vcombine.low %v5016_v30, %v5018_v40 }
 0x4ff   : > { %v5030_v56 = vmul.f32 %v5028_v6, %v5025_v27 }
 0x501   : > { %5031 = vst [vmem:[%s379_s14] sm:$0xff] %v5030_v56 }
 0x502   : > { %6273 = shalt.err (!%p6270_p3)
}
 0x503   : > { %s6274_s30 = scalar_lea.hbm %s7741_s25, 128  ;;  %s6278_s16 = scalar_lea.hbm %s7794_s11, 256 }
 0x504   : > { %p6275_p4 = scmp.ne.s32.totalorder %s7741_s25, %s6274_s30  ;;  %p6279_p9 = scmp.lt.u32.totalorder %s7741_s25, %s7794_s11 }
 0x505   : > { %p6280_p10 = scmp.lt.u32.totalorder %s6278_s16, %s6274_s30  ;;  %p6282_p12 = scmp.lt.u32.totalorder %s6274_s30, %s7741_s25 }
 0x506   : > { %p6276_p7 = pnand %p6275_p4, %p6426_p5 }
 0x507   : > { %p6281_p11 = por %p6280_p10, %p6279_p9 }
 0x508   : > { %p6277_p8 = pneg %p6276_p7 }
 0x509   : > { %p6283_p13 = por %p6282_p12, %p6281_p11 }
 0x50b   : > { %p6284_p0 = pnand %p6283_p13, %p6277_p8 }
 0x50d   : > { %6287 = shalt.err (!%p6284_p0)
}
 0x50e   : > { %6206 = dma.vmem_to_hbm [thread:$0]  (%p6426_p5), %s7743_s15, 128, %s7741_s25, %s5033_s29  }
 0x50f PF: > { %p6212_p1 = scmp.ge.s32.totalorder %s6322_s20, 2  ;;  %s5059_s0 = sand.u32 1, %s6310_s17  }
 0x510   : > { %s5060_s24 = scalar_lea.sflag [#allocation3], %s5059_s0 }
 0x511   : > { %p6209_p2 = pnand %p6212_p1, %p6430_p6 }
 0x513   : > { %6305 = dma.done.wait (!%p6209_p2), %s5060_s24, 128  }
 0x514   : > { %6307 = vsyncadd (!%p6209_p2), %s5060_s24, 4294967168  ;;  %p21_p3 = scmp.ge.s32.totalorder %s6413_s23, 4   ;;  %s8013_s17 = smov %s6314_s18 }
 0x515   : > { %s8014_s18 = smov %s6318_s19  ;;  %s8015_s19 = smov %s6424_s26 }
 0x516   : > { %s8016_s20 = smov %s6413_s23  ;;  %23 = sbr.rel (!%p21_p3) target bundleno = 5 (0x5), region = 99 }
 0x51d   :  { %5065 = vsyncpa [#allocation3], 1 }
 0x51e   :  { %5067 = vsyncpa [#allocation3 + $0x1], 1 }

</bundles_post_ra>
